<compile_context>
chip_gen: v7x
topology: tpu7x:2x2x1
jax: 0.10.0
libtpu: 0.0.40
codegen_flags: <defaults>
</compile_context>

<pallas_src>
import math
import functools

import jax
import jax.numpy as jnp
from jax.experimental import pallas as pl
from jax.experimental.pallas import tpu as pltpu


# ----------------------------------------------------------------------------
# tiling helper
# ----------------------------------------------------------------------------

def _tile(n, target=256):
    """Largest row tile <= target that divides n and is a multiple of 8,
    falling back to the full extent (always a legal block)."""
    if n <= target:
        return n
    t = (target // 8) * 8
    while t >= 8:
        if n % t == 0:
            return t
        t -= 8
    return n


# ----------------------------------------------------------------------------
# Pallas kernels
# ----------------------------------------------------------------------------

def _input_proj_pe_kernel(x_ref, w_ref, b_ref, pe_ref, o_ref):
    """o = x @ w + b + pe   (positional encoding fused into the epilogue)."""
    x = x_ref[0]                                               # (ts, In)
    y = jnp.dot(x, w_ref[...], preferred_element_type=jnp.float32)
    y = y + b_ref[...] + pe_ref[...]
    o_ref[0] = y.astype(o_ref.dtype)


def input_proj_pe(x, w, b, pe):
    """x:(B,S,In) w:(In,D) b:(D,) pe:(S,D) -> (B,S,D)"""
    B, S, In = x.shape
    D = w.shape[1]
    ts = _tile(S)
    return pl.pallas_call(
        _input_proj_pe_kernel,
        out_shape=jax.ShapeDtypeStruct((B, S, D), x.dtype),
        grid=(B, S // ts),
        in_specs=[
            pl.BlockSpec((1, ts, In), lambda b_, s_: (b_, s_, 0)),
            pl.BlockSpec((In, D), lambda b_, s_: (0, 0)),
            pl.BlockSpec((1, D), lambda b_, s_: (0, 0)),
            pl.BlockSpec((ts, D), lambda b_, s_: (s_, 0)),
        ],
        out_specs=pl.BlockSpec((1, ts, D), lambda b_, s_: (b_, s_, 0)),
        compiler_params=pltpu.CompilerParams(
            dimension_semantics=("parallel", "parallel")),
    )(x, w, b.reshape(1, D), pe)


def _encoder_layer_kernel(x_ref, wq_ref, wk_ref, wv_ref, bq_ref, bk_ref, bv_ref,
                          wo_ref, bo_ref, g1_ref, bb1_ref,
                          w1_ref, b1_ref, w2_ref, b2_ref, g2_ref, bb2_ref,
                          o_ref, *, nhead, scale, eps):
    """One full post-norm TransformerEncoderLayer for one batch element.

    All intermediates (per-head scores, attention output, FFN hidden) stay in
    VMEM / vregs. Heads are selected with lane masks so every matmul stays
    full-width; for D <= 128 the masked full-D matmul costs the same MXU time
    as a per-head Dh-wide one."""
    x = x_ref[0].astype(jnp.float32)                           # (S, D)
    S, D = x.shape
    Dh = D // nhead

    # ---- QKV projections ----
    q = jnp.dot(x, wq_ref[...], preferred_element_type=jnp.float32) + bq_ref[...]
    k = jnp.dot(x, wk_ref[...], preferred_element_type=jnp.float32) + bk_ref[...]
    v = jnp.dot(x, wv_ref[...], preferred_element_type=jnp.float32) + bv_ref[...]

    # ---- multi-head attention via lane masks ----
    lane = jax.lax.broadcasted_iota(jnp.int32, (1, D), 1)
    attn = jnp.zeros((S, D), jnp.float32)
    for h in range(nhead):
        mask = ((lane >= h * Dh) & (lane < (h + 1) * Dh)).astype(jnp.float32)
        s = jax.lax.dot_general(q, k * mask, (((1,), (1,)), ((), ())),
                                preferred_element_type=jnp.float32) * scale
        m = jnp.max(s, axis=-1, keepdims=True)
        p = jnp.exp(s - m)
        denom = jnp.sum(p, axis=-1, keepdims=True)
        p = p * pl.reciprocal(denom, approx=True)              # EUP slot, ~free
        attn = attn + jnp.dot(p, v * mask, preferred_element_type=jnp.float32)

    # ---- output projection + residual + LayerNorm1 ----
    y = jnp.dot(attn, wo_ref[...], preferred_element_type=jnp.float32)
    y = y + bo_ref[...] + x
    mean = jnp.mean(y, axis=-1, keepdims=True)
    yc = y - mean
    var = jnp.mean(yc * yc, axis=-1, keepdims=True)
    x1 = yc * jax.lax.rsqrt(var + eps) * g1_ref[...] + bb1_ref[...]

    # ---- FFN (ReLU) + residual + LayerNorm2; (S,4D) never leaves VMEM ----
    hmid = jnp.dot(x1, w1_ref[...], preferred_element_type=jnp.float32) + b1_ref[...]
    hmid = jnp.maximum(hmid, 0.0)
    y2 = jnp.dot(hmid, w2_ref[...], preferred_element_type=jnp.float32)
    y2 = y2 + b2_ref[...] + x1
    mean2 = jnp.mean(y2, axis=-1, keepdims=True)
    yc2 = y2 - mean2
    var2 = jnp.mean(yc2 * yc2, axis=-1, keepdims=True)
    out = yc2 * jax.lax.rsqrt(var2 + eps) * g2_ref[...] + bb2_ref[...]

    o_ref[0] = out.astype(o_ref.dtype)


def encoder_layer(x, p, nhead, eps=1e-5):
    """x: (B, S, D) -> (B, S, D). One fused kernel per batch element."""
    B, S, D = x.shape
    F = p["w_ff1"].shape[1]
    scale = 1.0 / math.sqrt(D // nhead)

    def vec(a):
        return a.reshape(1, -1)

    kernel = functools.partial(_encoder_layer_kernel,
                               nhead=nhead, scale=scale, eps=eps)
    act_spec = pl.BlockSpec((1, S, D), lambda b_: (b_, 0, 0))
    dd = pl.BlockSpec((D, D), lambda b_: (0, 0))
    d1 = pl.BlockSpec((1, D), lambda b_: (0, 0))
    df = pl.BlockSpec((D, F), lambda b_: (0, 0))
    f1 = pl.BlockSpec((1, F), lambda b_: (0, 0))
    fd = pl.BlockSpec((F, D), lambda b_: (0, 0))

    return pl.pallas_call(
        kernel,
        out_shape=jax.ShapeDtypeStruct((B, S, D), x.dtype),
        grid=(B,),
        in_specs=[
            act_spec,                   # x
            dd, dd, dd,                 # wq, wk, wv
            d1, d1, d1,                 # bq, bk, bv
            dd, d1,                     # wo, bo
            d1, d1,                     # ln1 gamma, beta
            df, f1,                     # w_ff1, b_ff1
            fd, d1,                     # w_ff2, b_ff2
            d1, d1,                     # ln2 gamma, beta
        ],
        out_specs=act_spec,
        compiler_params=pltpu.CompilerParams(dimension_semantics=("parallel",)),
    )(x,
      p["w_q"], p["w_k"], p["w_v"],
      vec(p["b_q"]), vec(p["b_k"]), vec(p["b_v"]),
      p["w_o"], vec(p["b_o"]),
      vec(p["ln1_g"]), vec(p["ln1_b"]),
      p["w_ff1"], vec(p["b_ff1"]),
      p["w_ff2"], vec(p["b_ff2"]),
      vec(p["ln2_g"]), vec(p["ln2_b"]))


def _linear_kernel(x_ref, w_ref, b_ref, o_ref):
    y = jnp.dot(x_ref[...], w_ref[...], preferred_element_type=jnp.float32)
    o_ref[...] = (y + b_ref[...]).astype(o_ref.dtype)


def linear_lane_padded(x, w, b):
    """Final fc: pad N up to a multiple of 128 so stores are lane-dense
    (unmasked vst), slice the real columns back out in the wrapper."""
    M, K = x.shape
    N = w.shape[1]
    Np = max(128, ((N + 127) // 128) * 128)
    if Np != N:
        w = jnp.pad(w, ((0, 0), (0, Np - N)))
        b = jnp.pad(b, (0, Np - N))
    tm = _tile(M)
    out = pl.pallas_call(
        _linear_kernel,
        out_shape=jax.ShapeDtypeStruct((M, Np), x.dtype),
        grid=(M // tm,),
        in_specs=[
            pl.BlockSpec((tm, K), lambda i: (i, 0)),
            pl.BlockSpec((K, Np), lambda i: (0, 0)),
            pl.BlockSpec((1, Np), lambda i: (0, 0)),
        ],
        out_specs=pl.BlockSpec((tm, Np), lambda i: (i, 0)),
        compiler_params=pltpu.CompilerParams(dimension_semantics=("parallel",)),
    )(x, w, b.reshape(1, Np))
    return out[:, :N]


# ----------------------------------------------------------------------------
# Model glue (plain JAX: PE buffer, reshapes, parameter handling)
# ----------------------------------------------------------------------------

def positional_encoding(seq_len, hidden_size, dtype=jnp.float32):
    assert hidden_size % 2 == 0, "positional encoding assumes even hidden_size"
    position = jnp.arange(seq_len, dtype=jnp.float32)[:, None]
    div_term = jnp.exp(jnp.arange(0, hidden_size, 2, dtype=jnp.float32)
                       * -(math.log(10000.0) / hidden_size))
    pe = jnp.zeros((seq_len, hidden_size), jnp.float32)
    pe = pe.at[:, 0::2].set(jnp.sin(position * div_term))
    pe = pe.at[:, 1::2].set(jnp.cos(position * div_term))
    return pe.astype(dtype)


def transformer_forward(x, params, nhead, mode="spike_detection"):
    """x: (B, S, input_size)"""
    B, S, In = x.shape
    D = params["w_in"].shape[1]
    assert D % nhead == 0

    pe = positional_encoding(S, D, dtype=x.dtype)
    h = input_proj_pe(x, params["w_in"], params["b_in"], pe)   # proj + PE fused

    for lp in params["layers"]:
        h = encoder_layer(h, lp, nhead)                        # one kernel / layer

    if mode == "feature_extraction":
        return h[:, -1, :]
    elif mode == "spike_detection":
        out = linear_lane_padded(h.reshape(B * S, D),
                                 params["w_fc"], params["b_fc"])
        return out.reshape(B, S, -1)
    else:
        raise ValueError(f"Unsupported mode: {mode}")


# ----------------------------------------------------------------------------
# Deterministic parameter init (synthetic; mirrors PyTorch Linear init bounds)
# ----------------------------------------------------------------------------

def _init_linear(key, fan_in, fan_out):
    kw, kb = jax.random.split(key)
    bound = 1.0 / math.sqrt(fan_in)
    w = jax.random.uniform(kw, (fan_in, fan_out), jnp.float32, -bound, bound)
    b = jax.random.uniform(kb, (fan_out,), jnp.float32, -bound, bound)
    return w, b


def init_params(key, input_size, hidden_size, num_layers, output_size):
    keys = jax.random.split(key, 2 + num_layers)
    params = {"layers": []}
    params["w_in"], params["b_in"] = _init_linear(keys[0], input_size, hidden_size)
    for l in range(num_layers):
        ks = jax.random.split(keys[1 + l], 6)
        w_q, b_q = _init_linear(ks[0], hidden_size, hidden_size)
        w_k, b_k = _init_linear(ks[1], hidden_size, hidden_size)
        w_v, b_v = _init_linear(ks[2], hidden_size, hidden_size)
        w_o, b_o = _init_linear(ks[3], hidden_size, hidden_size)
        w_ff1, b_ff1 = _init_linear(ks[4], hidden_size, 4 * hidden_size)
        w_ff2, b_ff2 = _init_linear(ks[5], 4 * hidden_size, hidden_size)
        params["layers"].append(dict(
            w_q=w_q, b_q=b_q, w_k=w_k, b_k=b_k, w_v=w_v, b_v=b_v,
            w_o=w_o, b_o=b_o,
            w_ff1=w_ff1, b_ff1=b_ff1, w_ff2=w_ff2, b_ff2=b_ff2,
            ln1_g=jnp.ones((hidden_size,), jnp.float32),
            ln1_b=jnp.zeros((hidden_size,), jnp.float32),
            ln2_g=jnp.ones((hidden_size,), jnp.float32),
            ln2_b=jnp.zeros((hidden_size,), jnp.float32),
        ))
    params["w_fc"], params["b_fc"] = _init_linear(keys[-1], hidden_size, output_size)
    return params


# ----------------------------------------------------------------------------
# Main
# ----------------------------------------------------------------------------

if __name__ == "__main__":
    # Small shapes consistent with the module's forward:
    #   x: (batch, seq, input_size); mode='spike_detection' -> (batch, seq, output_size)
    batch, seq = 2, 8
    input_size, hidden_size, num_layers, output_size, nhead = 16, 32, 2, 4, 8

    key = jax.random.PRNGKey(0)
    kx, kp = jax.random.split(key)
    x = jax.random.normal(kx, (batch, seq, input_size), dtype=jnp.float32)
    params = init_params(kp, input_size, hidden_size, num_layers, output_size)

    fwd = jax.jit(functools.partial(transformer_forward, nhead=nhead,
                                    mode="spike_detection"))
    out = fwd(x, params)
    out = jax.block_until_ready(out)

    assert out.shape == (batch, seq, output_size), out.shape
    assert bool(jnp.all(jnp.isfinite(out)))
    print("KERNEL_OK")
</pallas_src>

<mosaic_0001>
module attributes {stable_mosaic.version = 11 : i64} {
  func.func @_input_proj_pe_kernel(%arg0: i32, %arg1: i32, %arg2: memref<1x8x16xf32, #tpu.memory_space<vmem>>, %arg3: memref<16x32xf32, #tpu.memory_space<vmem>>, %arg4: memref<1x32xf32, #tpu.memory_space<vmem>>, %arg5: memref<8x32xf32, #tpu.memory_space<vmem>>, %arg6: memref<1x8x32xf32, #tpu.memory_space<vmem>>) attributes {dimension_semantics = [#tpu.dimension_semantics<parallel>, #tpu.dimension_semantics<parallel>], iteration_bounds = array<i64: 2, 1>, scalar_prefetch = 0 : i64, scratch_operands = 0 : i64, tpu.core_type = #tpu.core_type<tc>, window_params = [{transform_indices = @transform_0, window_bounds = array<i64: 1, 8, 16>}, {pipeline_mode = #tpu.pipeline_mode<synchronous>, transform_indices = @transform_1, window_bounds = array<i64: 16, 32>}, {pipeline_mode = #tpu.pipeline_mode<synchronous>, transform_indices = @transform_2, window_bounds = array<i64: 1, 32>}, {transform_indices = @transform_3, window_bounds = array<i64: 8, 32>}, {transform_indices = @transform_4, window_bounds = array<i64: 1, 8, 32>}]} {
    %c0 = arith.constant 0 : index
    %c0_0 = arith.constant 0 : index
    %c0_1 = arith.constant 0 : index
    %0 = vector.load %arg2[%c0, %c0_0, %c0_1] : memref<1x8x16xf32, #tpu.memory_space<vmem>>, vector<1x8x16xf32>
    %1 = vector.shape_cast %0 : vector<1x8x16xf32> to vector<8x16xf32>
    %c0_2 = arith.constant 0 : index
    %c0_3 = arith.constant 0 : index
    %2 = vector.load %arg3[%c0_2, %c0_3] : memref<16x32xf32, #tpu.memory_space<vmem>>, vector<16x32xf32>
    %cst = arith.constant dense<0.000000e+00> : vector<8x32xf32>
    %3 = tpu.matmul %1, %2, %cst {dimension_numbers = #tpu.dot_dimension_numbers<[1], [0], [0], [1], [0, 0, 1, 1], [], []>} : vector<8x16xf32>, vector<16x32xf32>, vector<8x32xf32> -> vector<8x32xf32>
    %c0_4 = arith.constant 0 : index
    %c0_5 = arith.constant 0 : index
    %4 = vector.load %arg4[%c0_4, %c0_5] : memref<1x32xf32, #tpu.memory_space<vmem>>, vector<1x32xf32>
    %5 = vector.broadcast %4 : vector<1x32xf32> to vector<8x32xf32>
    %6 = arith.addf %3, %5 : vector<8x32xf32>
    %c0_6 = arith.constant 0 : index
    %c0_7 = arith.constant 0 : index
    %7 = vector.load %arg5[%c0_6, %c0_7] : memref<8x32xf32, #tpu.memory_space<vmem>>, vector<8x32xf32>
    %8 = arith.addf %6, %7 : vector<8x32xf32>
    %c0_8 = arith.constant 0 : index
    %c0_9 = arith.constant 0 : index
    %c0_10 = arith.constant 0 : index
    %9 = vector.load %arg6[%c0_8, %c0_9, %c0_10] : memref<1x8x32xf32, #tpu.memory_space<vmem>>, vector<1x8x32xf32>
    %10 = vector.shape_cast %9 : vector<1x8x32xf32> to vector<8x32xf32>
    %11 = vector.shape_cast %8 : vector<8x32xf32> to vector<1x8x32xf32>
    tpu.vector_store %arg6[%c0_8, %c0_9, %c0_10], %11 {strides = array<i32>} : memref<1x8x32xf32, #tpu.memory_space<vmem>>, vector<1x8x32xf32>,
    return
  }
  func.func @transform_0(%arg0: i32, %arg1: i32) -> (i32, i32, i32) {
    %c0_i32 = arith.constant 0 : i32
    %c0_i32_0 = arith.constant 0 : i32
    return %arg0, %arg1, %c0_i32 : i32, i32, i32
  }
  func.func @transform_1(%arg0: i32, %arg1: i32) -> (i32, i32) {
    %c0_i32 = arith.constant 0 : i32
    %c0_i32_0 = arith.constant 0 : i32
    %c0_i32_1 = arith.constant 0 : i32
    return %c0_i32, %c0_i32_0 : i32, i32
  }
  func.func @transform_2(%arg0: i32, %arg1: i32) -> (i32, i32) {
    %c0_i32 = arith.constant 0 : i32
    %c0_i32_0 = arith.constant 0 : i32
    %c0_i32_1 = arith.constant 0 : i32
    return %c0_i32, %c0_i32_0 : i32, i32
  }
  func.func @transform_3(%arg0: i32, %arg1: i32) -> (i32, i32) {
    %c0_i32 = arith.constant 0 : i32
    %c0_i32_0 = arith.constant 0 : i32
    return %arg1, %c0_i32 : i32, i32
  }
  func.func @transform_4(%arg0: i32, %arg1: i32) -> (i32, i32, i32) {
    %c0_i32 = arith.constant 0 : i32
    %c0_i32_0 = arith.constant 0 : i32
    return %arg0, %arg1, %c0_i32 : i32, i32, i32
  }
}

module attributes {stable_mosaic.version = 11 : i64} {
  func.func @_encoder_layer_kernel(%arg0: i32, %arg1: memref<1x8x32xf32, #tpu.memory_space<vmem>>, %arg2: memref<32x32xf32, #tpu.memory_space<vmem>>, %arg3: memref<32x32xf32, #tpu.memory_space<vmem>>, %arg4: memref<32x32xf32, #tpu.memory_space<vmem>>, %arg5: memref<1x32xf32, #tpu.memory_space<vmem>>, %arg6: memref<1x32xf32, #tpu.memory_space<vmem>>, %arg7: memref<1x32xf32, #tpu.memory_space<vmem>>, %arg8: memref<32x32xf32, #tpu.memory_space<vmem>>, %arg9: memref<1x32xf32, #tpu.memory_space<vmem>>, %arg10: memref<1x32xf32, #tpu.memory_space<vmem>>, %arg11: memref<1x32xf32, #tpu.memory_space<vmem>>, %arg12: memref<32x128xf32, #tpu.memory_space<vmem>>, %arg13: memref<1x128xf32, #tpu.memory_space<vmem>>, %arg14: memref<128x32xf32, #tpu.memory_space<vmem>>, %arg15: memref<1x32xf32, #tpu.memory_space<vmem>>, %arg16: memref<1x32xf32, #tpu.memory_space<vmem>>, %arg17: memref<1x32xf32, #tpu.memory_space<vmem>>, %arg18: memref<1x8x32xf32, #tpu.memory_space<vmem>>) attributes {dimension_semantics = [#tpu.dimension_semantics<parallel>], iteration_bounds = array<i64: 2>, scalar_prefetch = 0 : i64, scratch_operands = 0 : i64, tpu.core_type = #tpu.core_type<tc>, window_params = [{transform_indices = @transform_0, window_bounds = array<i64: 1, 8, 32>}, {pipeline_mode = #tpu.pipeline_mode<synchronous>, transform_indices = @transform_1, window_bounds = array<i64: 32, 32>}, {pipeline_mode = #tpu.pipeline_mode<synchronous>, transform_indices = @transform_2, window_bounds = array<i64: 32, 32>}, {pipeline_mode = #tpu.pipeline_mode<synchronous>, transform_indices = @transform_3, window_bounds = array<i64: 32, 32>}, {pipeline_mode = #tpu.pipeline_mode<synchronous>, transform_indices = @transform_4, window_bounds = array<i64: 1, 32>}, {pipeline_mode = #tpu.pipeline_mode<synchronous>, transform_indices = @transform_5, window_bounds = array<i64: 1, 32>}, {pipeline_mode = #tpu.pipeline_mode<synchronous>, transform_indices = @transform_6, window_bounds = array<i64: 1, 32>}, {pipeline_mode = #tpu.pipeline_mode<synchronous>, transform_indices = @transform_7, window_bounds = array<i64: 32, 32>}, {pipeline_mode = #tpu.pipeline_mode<synchronous>, transform_indices = @transform_8, window_bounds = array<i64: 1, 32>}, {pipeline_mode = #tpu.pipeline_mode<synchronous>, transform_indices = @transform_9, window_bounds = array<i64: 1, 32>}, {pipeline_mode = #tpu.pipeline_mode<synchronous>, transform_indices = @transform_10, window_bounds = array<i64: 1, 32>}, {pipeline_mode = #tpu.pipeline_mode<synchronous>, transform_indices = @transform_11, window_bounds = array<i64: 32, 128>}, {pipeline_mode = #tpu.pipeline_mode<synchronous>, transform_indices = @transform_12, window_bounds = array<i64: 1, 128>}, {pipeline_mode = #tpu.pipeline_mode<synchronous>, transform_indices = @transform_13, window_bounds = array<i64: 128, 32>}, {pipeline_mode = #tpu.pipeline_mode<synchronous>, transform_indices = @transform_14, window_bounds = array<i64: 1, 32>}, {pipeline_mode = #tpu.pipeline_mode<synchronous>, transform_indices = @transform_15, window_bounds = array<i64: 1, 32>}, {pipeline_mode = #tpu.pipeline_mode<synchronous>, transform_indices = @transform_16, window_bounds = array<i64: 1, 32>}, {transform_indices = @transform_17, window_bounds = array<i64: 1, 8, 32>}]} {
    %c0 = arith.constant 0 : index
    %c0_0 = arith.constant 0 : index
    %c0_1 = arith.constant 0 : index
    %0 = vector.load %arg1[%c0, %c0_0, %c0_1] : memref<1x8x32xf32, #tpu.memory_space<vmem>>, vector<1x8x32xf32>
    %1 = vector.shape_cast %0 : vector<1x8x32xf32> to vector<8x32xf32>
    %c0_2 = arith.constant 0 : index
    %c0_3 = arith.constant 0 : index
    %2 = vector.load %arg2[%c0_2, %c0_3] : memref<32x32xf32, #tpu.memory_space<vmem>>, vector<32x32xf32>
    %cst = arith.constant dense<0.000000e+00> : vector<8x32xf32>
    %3 = tpu.matmul %1, %2, %cst {dimension_numbers = #tpu.dot_dimension_numbers<[1], [0], [0], [1], [0, 0, 1, 1], [], []>} : vector<8x32xf32>, vector<32x32xf32>, vector<8x32xf32> -> vector<8x32xf32>
    %c0_4 = arith.constant 0 : index
    %c0_5 = arith.constant 0 : index
    %4 = vector.load %arg5[%c0_4, %c0_5] : memref<1x32xf32, #tpu.memory_space<vmem>>, vector<1x32xf32>
    %5 = vector.broadcast %4 : vector<1x32xf32> to vector<8x32xf32>
    %6 = arith.addf %3, %5 : vector<8x32xf32>
    %c0_6 = arith.constant 0 : index
    %c0_7 = arith.constant 0 : index
    %7 = vector.load %arg3[%c0_6, %c0_7] : memref<32x32xf32, #tpu.memory_space<vmem>>, vector<32x32xf32>
    %cst_8 = arith.constant dense<0.000000e+00> : vector<8x32xf32>
    %8 = tpu.matmul %1, %7, %cst_8 {dimension_numbers = #tpu.dot_dimension_numbers<[1], [0], [0], [1], [0, 0, 1, 1], [], []>} : vector<8x32xf32>, vector<32x32xf32>, vector<8x32xf32> -> vector<8x32xf32>
    %c0_9 = arith.constant 0 : index
    %c0_10 = arith.constant 0 : index
    %9 = vector.load %arg6[%c0_9, %c0_10] : memref<1x32xf32, #tpu.memory_space<vmem>>, vector<1x32xf32>
    %10 = vector.broadcast %9 : vector<1x32xf32> to vector<8x32xf32>
    %11 = arith.addf %8, %10 : vector<8x32xf32>
    %c0_11 = arith.constant 0 : index
    %c0_12 = arith.constant 0 : index
    %12 = vector.load %arg4[%c0_11, %c0_12] : memref<32x32xf32, #tpu.memory_space<vmem>>, vector<32x32xf32>
    %cst_13 = arith.constant dense<0.000000e+00> : vector<8x32xf32>
    %13 = tpu.matmul %1, %12, %cst_13 {dimension_numbers = #tpu.dot_dimension_numbers<[1], [0], [0], [1], [0, 0, 1, 1], [], []>} : vector<8x32xf32>, vector<32x32xf32>, vector<8x32xf32> -> vector<8x32xf32>
    %c0_14 = arith.constant 0 : index
    %c0_15 = arith.constant 0 : index
    %14 = vector.load %arg7[%c0_14, %c0_15] : memref<1x32xf32, #tpu.memory_space<vmem>>, vector<1x32xf32>
    %15 = vector.broadcast %14 : vector<1x32xf32> to vector<8x32xf32>
    %16 = arith.addf %13, %15 : vector<8x32xf32>
    %17 = tpu.iota {dimensions = array<i32: 1>} : vector<1x32xi32>
    %cst_16 = arith.constant 0.000000e+00 : f32
    %18 = vector.broadcast %cst_16 : f32 to vector<8x32xf32>
    %c0_i32 = arith.constant 0 : i32
    %19 = vector.broadcast %c0_i32 : i32 to vector<1x32xi32>
    %20 = arith.cmpi sge, %17, %19 : vector<1x32xi32>
    %c4_i32 = arith.constant 4 : i32
    %21 = vector.broadcast %c4_i32 : i32 to vector<1x32xi32>
    %22 = arith.cmpi slt, %17, %21 : vector<1x32xi32>
    %23 = arith.andi %20, %22 : vector<1x32xi1>
    %24 = arith.extui %23 : vector<1x32xi1> to vector<1x32xi32>
    %25 = arith.sitofp %24 : vector<1x32xi32> to vector<1x32xf32>
    %26 = vector.broadcast %25 : vector<1x32xf32> to vector<8x32xf32>
    %27 = arith.mulf %11, %26 : vector<8x32xf32>
    %cst_17 = arith.constant dense<0.000000e+00> : vector<8x8xf32>
    %28 = tpu.matmul %6, %27, %cst_17 {dimension_numbers = #tpu.dot_dimension_numbers<[1], [1], [0], [0], [0, 0, 1, 0], [], []>} : vector<8x32xf32>, vector<8x32xf32>, vector<8x8xf32> -> vector<8x8xf32>
    %cst_18 = arith.constant 5.000000e-01 : f32
    %29 = vector.broadcast %cst_18 : f32 to vector<8x8xf32>
    %30 = arith.mulf %28, %29 : vector<8x8xf32>
    %cst_19 = arith.constant dense<0xFF800000> : vector<8xf32>
    %31 = vector.multi_reduction <maximumf>, %30, %cst_19 [1] : vector<8x8xf32> to vector<8xf32>
    %32 = vector.shape_cast %31 : vector<8xf32> to vector<8x1xf32>
    %33 = vector.broadcast %32 : vector<8x1xf32> to vector<8x8xf32>
    %34 = arith.subf %30, %33 : vector<8x8xf32>
    %35 = math.exp %34 : vector<8x8xf32>
    %cst_20 = arith.constant dense<0.000000e+00> : vector<8xf32>
    %36 = vector.multi_reduction <add>, %35, %cst_20 [1] : vector<8x8xf32> to vector<8xf32>
    %37 = vector.shape_cast %36 : vector<8xf32> to vector<8x1xf32>
    %38 = tpu.reciprocal %37 {approx = true} : vector<8x1xf32> -> vector<8x1xf32>
    %39 = vector.broadcast %38 : vector<8x1xf32> to vector<8x8xf32>
    %40 = arith.mulf %35, %39 : vector<8x8xf32>
    %41 = vector.broadcast %25 : vector<1x32xf32> to vector<8x32xf32>
    %42 = arith.mulf %16, %41 : vector<8x32xf32>
    %cst_21 = arith.constant dense<0.000000e+00> : vector<8x32xf32>
    %43 = tpu.matmul %40, %42, %cst_21 {dimension_numbers = #tpu.dot_dimension_numbers<[1], [0], [0], [1], [0, 0, 1, 1], [], []>} : vector<8x8xf32>, vector<8x32xf32>, vector<8x32xf32> -> vector<8x32xf32>
    %44 = arith.addf %18, %43 : vector<8x32xf32>
    %c4_i32_22 = arith.constant 4 : i32
    %45 = vector.broadcast %c4_i32_22 : i32 to vector<1x32xi32>
    %46 = arith.cmpi sge, %17, %45 : vector<1x32xi32>
    %c8_i32 = arith.constant 8 : i32
    %47 = vector.broadcast %c8_i32 : i32 to vector<1x32xi32>
    %48 = arith.cmpi slt, %17, %47 : vector<1x32xi32>
    %49 = arith.andi %46, %48 : vector<1x32xi1>
    %50 = arith.extui %49 : vector<1x32xi1> to vector<1x32xi32>
    %51 = arith.sitofp %50 : vector<1x32xi32> to vector<1x32xf32>
    %52 = vector.broadcast %51 : vector<1x32xf32> to vector<8x32xf32>
    %53 = arith.mulf %11, %52 : vector<8x32xf32>
    %cst_23 = arith.constant dense<0.000000e+00> : vector<8x8xf32>
    %54 = tpu.matmul %6, %53, %cst_23 {dimension_numbers = #tpu.dot_dimension_numbers<[1], [1], [0], [0], [0, 0, 1, 0], [], []>} : vector<8x32xf32>, vector<8x32xf32>, vector<8x8xf32> -> vector<8x8xf32>
    %cst_24 = arith.constant 5.000000e-01 : f32
    %55 = vector.broadcast %cst_24 : f32 to vector<8x8xf32>
    %56 = arith.mulf %54, %55 : vector<8x8xf32>
    %cst_25 = arith.constant dense<0xFF800000> : vector<8xf32>
    %57 = vector.multi_reduction <maximumf>, %56, %cst_25 [1] : vector<8x8xf32> to vector<8xf32>
    %58 = vector.shape_cast %57 : vector<8xf32> to vector<8x1xf32>
    %59 = vector.broadcast %58 : vector<8x1xf32> to vector<8x8xf32>
    %60 = arith.subf %56, %59 : vector<8x8xf32>
    %61 = math.exp %60 : vector<8x8xf32>
    %cst_26 = arith.constant dense<0.000000e+00> : vector<8xf32>
    %62 = vector.multi_reduction <add>, %61, %cst_26 [1] : vector<8x8xf32> to vector<8xf32>
    %63 = vector.shape_cast %62 : vector<8xf32> to vector<8x1xf32>
    %64 = tpu.reciprocal %63 {approx = true} : vector<8x1xf32> -> vector<8x1xf32>
    %65 = vector.broadcast %64 : vector<8x1xf32> to vector<8x8xf32>
    %66 = arith.mulf %61, %65 : vector<8x8xf32>
    %67 = vector.broadcast %51 : vector<1x32xf32> to vector<8x32xf32>
    %68 = arith.mulf %16, %67 : vector<8x32xf32>
    %cst_27 = arith.constant dense<0.000000e+00> : vector<8x32xf32>
    %69 = tpu.matmul %66, %68, %cst_27 {dimension_numbers = #tpu.dot_dimension_numbers<[1], [0], [0], [1], [0, 0, 1, 1], [], []>} : vector<8x8xf32>, vector<8x32xf32>, vector<8x32xf32> -> vector<8x32xf32>
    %70 = arith.addf %44, %69 : vector<8x32xf32>
    %c8_i32_28 = arith.constant 8 : i32
    %71 = vector.broadcast %c8_i32_28 : i32 to vector<1x32xi32>
    %72 = arith.cmpi sge, %17, %71 : vector<1x32xi32>
    %c12_i32 = arith.constant 12 : i32
    %73 = vector.broadcast %c12_i32 : i32 to vector<1x32xi32>
    %74 = arith.cmpi slt, %17, %73 : vector<1x32xi32>
    %75 = arith.andi %72, %74 : vector<1x32xi1>
    %76 = arith.extui %75 : vector<1x32xi1> to vector<1x32xi32>
    %77 = arith.sitofp %76 : vector<1x32xi32> to vector<1x32xf32>
    %78 = vector.broadcast %77 : vector<1x32xf32> to vector<8x32xf32>
    %79 = arith.mulf %11, %78 : vector<8x32xf32>
    %cst_29 = arith.constant dense<0.000000e+00> : vector<8x8xf32>
    %80 = tpu.matmul %6, %79, %cst_29 {dimension_numbers = #tpu.dot_dimension_numbers<[1], [1], [0], [0], [0, 0, 1, 0], [], []>} : vector<8x32xf32>, vector<8x32xf32>, vector<8x8xf32> -> vector<8x8xf32>
    %cst_30 = arith.constant 5.000000e-01 : f32
    %81 = vector.broadcast %cst_30 : f32 to vector<8x8xf32>
    %82 = arith.mulf %80, %81 : vector<8x8xf32>
    %cst_31 = arith.constant dense<0xFF800000> : vector<8xf32>
    %83 = vector.multi_reduction <maximumf>, %82, %cst_31 [1] : vector<8x8xf32> to vector<8xf32>
    %84 = vector.shape_cast %83 : vector<8xf32> to vector<8x1xf32>
    %85 = vector.broadcast %84 : vector<8x1xf32> to vector<8x8xf32>
    %86 = arith.subf %82, %85 : vector<8x8xf32>
    %87 = math.exp %86 : vector<8x8xf32>
    %cst_32 = arith.constant dense<0.000000e+00> : vector<8xf32>
    %88 = vector.multi_reduction <add>, %87, %cst_32 [1] : vector<8x8xf32> to vector<8xf32>
    %89 = vector.shape_cast %88 : vector<8xf32> to vector<8x1xf32>
    %90 = tpu.reciprocal %89 {approx = true} : vector<8x1xf32> -> vector<8x1xf32>
    %91 = vector.broadcast %90 : vector<8x1xf32> to vector<8x8xf32>
    %92 = arith.mulf %87, %91 : vector<8x8xf32>
    %93 = vector.broadcast %77 : vector<1x32xf32> to vector<8x32xf32>
    %94 = arith.mulf %16, %93 : vector<8x32xf32>
    %cst_33 = arith.constant dense<0.000000e+00> : vector<8x32xf32>
    %95 = tpu.matmul %92, %94, %cst_33 {dimension_numbers = #tpu.dot_dimension_numbers<[1], [0], [0], [1], [0, 0, 1, 1], [], []>} : vector<8x8xf32>, vector<8x32xf32>, vector<8x32xf32> -> vector<8x32xf32>
    %96 = arith.addf %70, %95 : vector<8x32xf32>
    %c12_i32_34 = arith.constant 12 : i32
    %97 = vector.broadcast %c12_i32_34 : i32 to vector<1x32xi32>
    %98 = arith.cmpi sge, %17, %97 : vector<1x32xi32>
    %c16_i32 = arith.constant 16 : i32
    %99 = vector.broadcast %c16_i32 : i32 to vector<1x32xi32>
    %100 = arith.cmpi slt, %17, %99 : vector<1x32xi32>
    %101 = arith.andi %98, %100 : vector<1x32xi1>
    %102 = arith.extui %101 : vector<1x32xi1> to vector<1x32xi32>
    %103 = arith.sitofp %102 : vector<1x32xi32> to vector<1x32xf32>
    %104 = vector.broadcast %103 : vector<1x32xf32> to vector<8x32xf32>
    %105 = arith.mulf %11, %104 : vector<8x32xf32>
    %cst_35 = arith.constant dense<0.000000e+00> : vector<8x8xf32>
    %106 = tpu.matmul %6, %105, %cst_35 {dimension_numbers = #tpu.dot_dimension_numbers<[1], [1], [0], [0], [0, 0, 1, 0], [], []>} : vector<8x32xf32>, vector<8x32xf32>, vector<8x8xf32> -> vector<8x8xf32>
    %cst_36 = arith.constant 5.000000e-01 : f32
    %107 = vector.broadcast %cst_36 : f32 to vector<8x8xf32>
    %108 = arith.mulf %106, %107 : vector<8x8xf32>
    %cst_37 = arith.constant dense<0xFF800000> : vector<8xf32>
    %109 = vector.multi_reduction <maximumf>, %108, %cst_37 [1] : vector<8x8xf32> to vector<8xf32>
    %110 = vector.shape_cast %109 : vector<8xf32> to vector<8x1xf32>
    %111 = vector.broadcast %110 : vector<8x1xf32> to vector<8x8xf32>
    %112 = arith.subf %108, %111 : vector<8x8xf32>
    %113 = math.exp %112 : vector<8x8xf32>
    %cst_38 = arith.constant dense<0.000000e+00> : vector<8xf32>
    %114 = vector.multi_reduction <add>, %113, %cst_38 [1] : vector<8x8xf32> to vector<8xf32>
    %115 = vector.shape_cast %114 : vector<8xf32> to vector<8x1xf32>
    %116 = tpu.reciprocal %115 {approx = true} : vector<8x1xf32> -> vector<8x1xf32>
    %117 = vector.broadcast %116 : vector<8x1xf32> to vector<8x8xf32>
    %118 = arith.mulf %113, %117 : vector<8x8xf32>
    %119 = vector.broadcast %103 : vector<1x32xf32> to vector<8x32xf32>
    %120 = arith.mulf %16, %119 : vector<8x32xf32>
    %cst_39 = arith.constant dense<0.000000e+00> : vector<8x32xf32>
    %121 = tpu.matmul %118, %120, %cst_39 {dimension_numbers = #tpu.dot_dimension_numbers<[1], [0], [0], [1], [0, 0, 1, 1], [], []>} : vector<8x8xf32>, vector<8x32xf32>, vector<8x32xf32> -> vector<8x32xf32>
    %122 = arith.addf %96, %121 : vector<8x32xf32>
    %c16_i32_40 = arith.constant 16 : i32
    %123 = vector.broadcast %c16_i32_40 : i32 to vector<1x32xi32>
    %124 = arith.cmpi sge, %17, %123 : vector<1x32xi32>
    %c20_i32 = arith.constant 20 : i32
    %125 = vector.broadcast %c20_i32 : i32 to vector<1x32xi32>
    %126 = arith.cmpi slt, %17, %125 : vector<1x32xi32>
    %127 = arith.andi %124, %126 : vector<1x32xi1>
    %128 = arith.extui %127 : vector<1x32xi1> to vector<1x32xi32>
    %129 = arith.sitofp %128 : vector<1x32xi32> to vector<1x32xf32>
    %130 = vector.broadcast %129 : vector<1x32xf32> to vector<8x32xf32>
    %131 = arith.mulf %11, %130 : vector<8x32xf32>
    %cst_41 = arith.constant dense<0.000000e+00> : vector<8x8xf32>
    %132 = tpu.matmul %6, %131, %cst_41 {dimension_numbers = #tpu.dot_dimension_numbers<[1], [1], [0], [0], [0, 0, 1, 0], [], []>} : vector<8x32xf32>, vector<8x32xf32>, vector<8x8xf32> -> vector<8x8xf32>
    %cst_42 = arith.constant 5.000000e-01 : f32
    %133 = vector.broadcast %cst_42 : f32 to vector<8x8xf32>
    %134 = arith.mulf %132, %133 : vector<8x8xf32>
    %cst_43 = arith.constant dense<0xFF800000> : vector<8xf32>
    %135 = vector.multi_reduction <maximumf>, %134, %cst_43 [1] : vector<8x8xf32> to vector<8xf32>
    %136 = vector.shape_cast %135 : vector<8xf32> to vector<8x1xf32>
    %137 = vector.broadcast %136 : vector<8x1xf32> to vector<8x8xf32>
    %138 = arith.subf %134, %137 : vector<8x8xf32>
    %139 = math.exp %138 : vector<8x8xf32>
    %cst_44 = arith.constant dense<0.000000e+00> : vector<8xf32>
    %140 = vector.multi_reduction <add>, %139, %cst_44 [1] : vector<8x8xf32> to vector<8xf32>
    %141 = vector.shape_cast %140 : vector<8xf32> to vector<8x1xf32>
    %142 = tpu.reciprocal %141 {approx = true} : vector<8x1xf32> -> vector<8x1xf32>
    %143 = vector.broadcast %142 : vector<8x1xf32> to vector<8x8xf32>
    %144 = arith.mulf %139, %143 : vector<8x8xf32>
    %145 = vector.broadcast %129 : vector<1x32xf32> to vector<8x32xf32>
    %146 = arith.mulf %16, %145 : vector<8x32xf32>
    %cst_45 = arith.constant dense<0.000000e+00> : vector<8x32xf32>
    %147 = tpu.matmul %144, %146, %cst_45 {dimension_numbers = #tpu.dot_dimension_numbers<[1], [0], [0], [1], [0, 0, 1, 1], [], []>} : vector<8x8xf32>, vector<8x32xf32>, vector<8x32xf32> -> vector<8x32xf32>
    %148 = arith.addf %122, %147 : vector<8x32xf32>
    %c20_i32_46 = arith.constant 20 : i32
    %149 = vector.broadcast %c20_i32_46 : i32 to vector<1x32xi32>
    %150 = arith.cmpi sge, %17, %149 : vector<1x32xi32>
    %c24_i32 = arith.constant 24 : i32
    %151 = vector.broadcast %c24_i32 : i32 to vector<1x32xi32>
    %152 = arith.cmpi slt, %17, %151 : vector<1x32xi32>
    %153 = arith.andi %150, %152 : vector<1x32xi1>
    %154 = arith.extui %153 : vector<1x32xi1> to vector<1x32xi32>
    %155 = arith.sitofp %154 : vector<1x32xi32> to vector<1x32xf32>
    %156 = vector.broadcast %155 : vector<1x32xf32> to vector<8x32xf32>
    %157 = arith.mulf %11, %156 : vector<8x32xf32>
    %cst_47 = arith.constant dense<0.000000e+00> : vector<8x8xf32>
    %158 = tpu.matmul %6, %157, %cst_47 {dimension_numbers = #tpu.dot_dimension_numbers<[1], [1], [0], [0], [0, 0, 1, 0], [], []>} : vector<8x32xf32>, vector<8x32xf32>, vector<8x8xf32> -> vector<8x8xf32>
    %cst_48 = arith.constant 5.000000e-01 : f32
    %159 = vector.broadcast %cst_48 : f32 to vector<8x8xf32>
    %160 = arith.mulf %158, %159 : vector<8x8xf32>
    %cst_49 = arith.constant dense<0xFF800000> : vector<8xf32>
    %161 = vector.multi_reduction <maximumf>, %160, %cst_49 [1] : vector<8x8xf32> to vector<8xf32>
    %162 = vector.shape_cast %161 : vector<8xf32> to vector<8x1xf32>
    %163 = vector.broadcast %162 : vector<8x1xf32> to vector<8x8xf32>
    %164 = arith.subf %160, %163 : vector<8x8xf32>
    %165 = math.exp %164 : vector<8x8xf32>
    %cst_50 = arith.constant dense<0.000000e+00> : vector<8xf32>
    %166 = vector.multi_reduction <add>, %165, %cst_50 [1] : vector<8x8xf32> to vector<8xf32>
    %167 = vector.shape_cast %166 : vector<8xf32> to vector<8x1xf32>
    %168 = tpu.reciprocal %167 {approx = true} : vector<8x1xf32> -> vector<8x1xf32>
    %169 = vector.broadcast %168 : vector<8x1xf32> to vector<8x8xf32>
    %170 = arith.mulf %165, %169 : vector<8x8xf32>
    %171 = vector.broadcast %155 : vector<1x32xf32> to vector<8x32xf32>
    %172 = arith.mulf %16, %171 : vector<8x32xf32>
    %cst_51 = arith.constant dense<0.000000e+00> : vector<8x32xf32>
    %173 = tpu.matmul %170, %172, %cst_51 {dimension_numbers = #tpu.dot_dimension_numbers<[1], [0], [0], [1], [0, 0, 1, 1], [], []>} : vector<8x8xf32>, vector<8x32xf32>, vector<8x32xf32> -> vector<8x32xf32>
    %174 = arith.addf %148, %173 : vector<8x32xf32>
    %c24_i32_52 = arith.constant 24 : i32
    %175 = vector.broadcast %c24_i32_52 : i32 to vector<1x32xi32>
    %176 = arith.cmpi sge, %17, %175 : vector<1x32xi32>
    %c28_i32 = arith.constant 28 : i32
    %177 = vector.broadcast %c28_i32 : i32 to vector<1x32xi32>
    %178 = arith.cmpi slt, %17, %177 : vector<1x32xi32>
    %179 = arith.andi %176, %178 : vector<1x32xi1>
    %180 = arith.extui %179 : vector<1x32xi1> to vector<1x32xi32>
    %181 = arith.sitofp %180 : vector<1x32xi32> to vector<1x32xf32>
    %182 = vector.broadcast %181 : vector<1x32xf32> to vector<8x32xf32>
    %183 = arith.mulf %11, %182 : vector<8x32xf32>
    %cst_53 = arith.constant dense<0.000000e+00> : vector<8x8xf32>
    %184 = tpu.matmul %6, %183, %cst_53 {dimension_numbers = #tpu.dot_dimension_numbers<[1], [1], [0], [0], [0, 0, 1, 0], [], []>} : vector<8x32xf32>, vector<8x32xf32>, vector<8x8xf32> -> vector<8x8xf32>
    %cst_54 = arith.constant 5.000000e-01 : f32
    %185 = vector.broadcast %cst_54 : f32 to vector<8x8xf32>
    %186 = arith.mulf %184, %185 : vector<8x8xf32>
    %cst_55 = arith.constant dense<0xFF800000> : vector<8xf32>
    %187 = vector.multi_reduction <maximumf>, %186, %cst_55 [1] : vector<8x8xf32> to vector<8xf32>
    %188 = vector.shape_cast %187 : vector<8xf32> to vector<8x1xf32>
    %189 = vector.broadcast %188 : vector<8x1xf32> to vector<8x8xf32>
    %190 = arith.subf %186, %189 : vector<8x8xf32>
    %191 = math.exp %190 : vector<8x8xf32>
    %cst_56 = arith.constant dense<0.000000e+00> : vector<8xf32>
    %192 = vector.multi_reduction <add>, %191, %cst_56 [1] : vector<8x8xf32> to vector<8xf32>
    %193 = vector.shape_cast %192 : vector<8xf32> to vector<8x1xf32>
    %194 = tpu.reciprocal %193 {approx = true} : vector<8x1xf32> -> vector<8x1xf32>
    %195 = vector.broadcast %194 : vector<8x1xf32> to vector<8x8xf32>
    %196 = arith.mulf %191, %195 : vector<8x8xf32>
    %197 = vector.broadcast %181 : vector<1x32xf32> to vector<8x32xf32>
    %198 = arith.mulf %16, %197 : vector<8x32xf32>
    %cst_57 = arith.constant dense<0.000000e+00> : vector<8x32xf32>
    %199 = tpu.matmul %196, %198, %cst_57 {dimension_numbers = #tpu.dot_dimension_numbers<[1], [0], [0], [1], [0, 0, 1, 1], [], []>} : vector<8x8xf32>, vector<8x32xf32>, vector<8x32xf32> -> vector<8x32xf32>
    %200 = arith.addf %174, %199 : vector<8x32xf32>
    %c28_i32_58 = arith.constant 28 : i32
    %201 = vector.broadcast %c28_i32_58 : i32 to vector<1x32xi32>
    %202 = arith.cmpi sge, %17, %201 : vector<1x32xi32>
    %c32_i32 = arith.constant 32 : i32
    %203 = vector.broadcast %c32_i32 : i32 to vector<1x32xi32>
    %204 = arith.cmpi slt, %17, %203 : vector<1x32xi32>
    %205 = arith.andi %202, %204 : vector<1x32xi1>
    %206 = arith.extui %205 : vector<1x32xi1> to vector<1x32xi32>
    %207 = arith.sitofp %206 : vector<1x32xi32> to vector<1x32xf32>
    %208 = vector.broadcast %207 : vector<1x32xf32> to vector<8x32xf32>
    %209 = arith.mulf %11, %208 : vector<8x32xf32>
    %cst_59 = arith.constant dense<0.000000e+00> : vector<8x8xf32>
    %210 = tpu.matmul %6, %209, %cst_59 {dimension_numbers = #tpu.dot_dimension_numbers<[1], [1], [0], [0], [0, 0, 1, 0], [], []>} : vector<8x32xf32>, vector<8x32xf32>, vector<8x8xf32> -> vector<8x8xf32>
    %cst_60 = arith.constant 5.000000e-01 : f32
    %211 = vector.broadcast %cst_60 : f32 to vector<8x8xf32>
    %212 = arith.mulf %210, %211 : vector<8x8xf32>
    %cst_61 = arith.constant dense<0xFF800000> : vector<8xf32>
    %213 = vector.multi_reduction <maximumf>, %212, %cst_61 [1] : vector<8x8xf32> to vector<8xf32>
    %214 = vector.shape_cast %213 : vector<8xf32> to vector<8x1xf32>
    %215 = vector.broadcast %214 : vector<8x1xf32> to vector<8x8xf32>
    %216 = arith.subf %212, %215 : vector<8x8xf32>
    %217 = math.exp %216 : vector<8x8xf32>
    %cst_62 = arith.constant dense<0.000000e+00> : vector<8xf32>
    %218 = vector.multi_reduction <add>, %217, %cst_62 [1] : vector<8x8xf32> to vector<8xf32>
    %219 = vector.shape_cast %218 : vector<8xf32> to vector<8x1xf32>
    %220 = tpu.reciprocal %219 {approx = true} : vector<8x1xf32> -> vector<8x1xf32>
    %221 = vector.broadcast %220 : vector<8x1xf32> to vector<8x8xf32>
    %222 = arith.mulf %217, %221 : vector<8x8xf32>
    %223 = vector.broadcast %207 : vector<1x32xf32> to vector<8x32xf32>
    %224 = arith.mulf %16, %223 : vector<8x32xf32>
    %cst_63 = arith.constant dense<0.000000e+00> : vector<8x32xf32>
    %225 = tpu.matmul %222, %224, %cst_63 {dimension_numbers = #tpu.dot_dimension_numbers<[1], [0], [0], [1], [0, 0, 1, 1], [], []>} : vector<8x8xf32>, vector<8x32xf32>, vector<8x32xf32> -> vector<8x32xf32>
    %226 = arith.addf %200, %225 : vector<8x32xf32>
    %c0_64 = arith.constant 0 : index
    %c0_65 = arith.constant 0 : index
    %227 = vector.load %arg8[%c0_64, %c0_65] : memref<32x32xf32, #tpu.memory_space<vmem>>, vector<32x32xf32>
    %cst_66 = arith.constant dense<0.000000e+00> : vector<8x32xf32>
    %228 = tpu.matmul %226, %227, %cst_66 {dimension_numbers = #tpu.dot_dimension_numbers<[1], [0], [0], [1], [0, 0, 1, 1], [], []>} : vector<8x32xf32>, vector<32x32xf32>, vector<8x32xf32> -> vector<8x32xf32>
    %c0_67 = arith.constant 0 : index
    %c0_68 = arith.constant 0 : index
    %229 = vector.load %arg9[%c0_67, %c0_68] : memref<1x32xf32, #tpu.memory_space<vmem>>, vector<1x32xf32>
    %230 = vector.broadcast %229 : vector<1x32xf32> to vector<8x32xf32>
    %231 = arith.addf %228, %230 : vector<8x32xf32>
    %232 = arith.addf %231, %1 : vector<8x32xf32>
    %cst_69 = arith.constant dense<0.000000e+00> : vector<8xf32>
    %233 = vector.multi_reduction <add>, %232, %cst_69 [1] : vector<8x32xf32> to vector<8xf32>
    %234 = vector.shape_cast %233 : vector<8xf32> to vector<8x1xf32>
    %cst_70 = arith.constant 3.200000e+01 : f32
    %235 = vector.broadcast %cst_70 : f32 to vector<8x1xf32>
    %236 = arith.divf %234, %235 : vector<8x1xf32>
    %237 = vector.broadcast %236 : vector<8x1xf32> to vector<8x32xf32>
    %238 = arith.subf %232, %237 : vector<8x32xf32>
    %239 = arith.mulf %238, %238 : vector<8x32xf32>
    %cst_71 = arith.constant dense<0.000000e+00> : vector<8xf32>
    %240 = vector.multi_reduction <add>, %239, %cst_71 [1] : vector<8x32xf32> to vector<8xf32>
    %241 = vector.shape_cast %240 : vector<8xf32> to vector<8x1xf32>
    %cst_72 = arith.constant 3.200000e+01 : f32
    %242 = vector.broadcast %cst_72 : f32 to vector<8x1xf32>
    %243 = arith.divf %241, %242 : vector<8x1xf32>
    %cst_73 = arith.constant 9.99999974E-6 : f32
    %244 = vector.broadcast %cst_73 : f32 to vector<8x1xf32>
    %245 = arith.addf %243, %244 : vector<8x1xf32>
    %246 = math.rsqrt %245 : vector<8x1xf32>
    %247 = vector.broadcast %246 : vector<8x1xf32> to vector<8x32xf32>
    %248 = arith.mulf %238, %247 : vector<8x32xf32>
    %c0_74 = arith.constant 0 : index
    %c0_75 = arith.constant 0 : index
    %249 = vector.load %arg10[%c0_74, %c0_75] : memref<1x32xf32, #tpu.memory_space<vmem>>, vector<1x32xf32>
    %250 = vector.broadcast %249 : vector<1x32xf32> to vector<8x32xf32>
    %251 = arith.mulf %248, %250 : vector<8x32xf32>
    %c0_76 = arith.constant 0 : index
    %c0_77 = arith.constant 0 : index
    %252 = vector.load %arg11[%c0_76, %c0_77] : memref<1x32xf32, #tpu.memory_space<vmem>>, vector<1x32xf32>
    %253 = vector.broadcast %252 : vector<1x32xf32> to vector<8x32xf32>
    %254 = arith.addf %251, %253 : vector<8x32xf32>
    %c0_78 = arith.constant 0 : index
    %c0_79 = arith.constant 0 : index
    %255 = vector.load %arg12[%c0_78, %c0_79] : memref<32x128xf32, #tpu.memory_space<vmem>>, vector<32x128xf32>
    %cst_80 = arith.constant dense<0.000000e+00> : vector<8x128xf32>
    %256 = tpu.matmul %254, %255, %cst_80 {dimension_numbers = #tpu.dot_dimension_numbers<[1], [0], [0], [1], [0, 0, 1, 1], [], []>} : vector<8x32xf32>, vector<32x128xf32>, vector<8x128xf32> -> vector<8x128xf32>
    %c0_81 = arith.constant 0 : index
    %c0_82 = arith.constant 0 : index
    %257 = vector.load %arg13[%c0_81, %c0_82] : memref<1x128xf32, #tpu.memory_space<vmem>>, vector<1x128xf32>
    %258 = vector.broadcast %257 : vector<1x128xf32> to vector<8x128xf32>
    %259 = arith.addf %256, %258 : vector<8x128xf32>
    %cst_83 = arith.constant 0.000000e+00 : f32
    %260 = vector.broadcast %cst_83 : f32 to vector<8x128xf32>
    %261 = arith.maximumf %259, %260 : vector<8x128xf32>
    %c0_84 = arith.constant 0 : index
    %c0_85 = arith.constant 0 : index
    %262 = vector.load %arg14[%c0_84, %c0_85] : memref<128x32xf32, #tpu.memory_space<vmem>>, vector<128x32xf32>
    %cst_86 = arith.constant dense<0.000000e+00> : vector<8x32xf32>
    %263 = tpu.matmul %261, %262, %cst_86 {dimension_numbers = #tpu.dot_dimension_numbers<[1], [0], [0], [1], [0, 0, 1, 1], [], []>} : vector<8x128xf32>, vector<128x32xf32>, vector<8x32xf32> -> vector<8x32xf32>
    %c0_87 = arith.constant 0 : index
    %c0_88 = arith.constant 0 : index
    %264 = vector.load %arg15[%c0_87, %c0_88] : memref<1x32xf32, #tpu.memory_space<vmem>>, vector<1x32xf32>
    %265 = vector.broadcast %264 : vector<1x32xf32> to vector<8x32xf32>
    %266 = arith.addf %263, %265 : vector<8x32xf32>
    %267 = arith.addf %266, %254 : vector<8x32xf32>
    %cst_89 = arith.constant dense<0.000000e+00> : vector<8xf32>
    %268 = vector.multi_reduction <add>, %267, %cst_89 [1] : vector<8x32xf32> to vector<8xf32>
    %269 = vector.shape_cast %268 : vector<8xf32> to vector<8x1xf32>
    %cst_90 = arith.constant 3.200000e+01 : f32
    %270 = vector.broadcast %cst_90 : f32 to vector<8x1xf32>
    %271 = arith.divf %269, %270 : vector<8x1xf32>
    %272 = vector.broadcast %271 : vector<8x1xf32> to vector<8x32xf32>
    %273 = arith.subf %267, %272 : vector<8x32xf32>
    %274 = arith.mulf %273, %273 : vector<8x32xf32>
    %cst_91 = arith.constant dense<0.000000e+00> : vector<8xf32>
    %275 = vector.multi_reduction <add>, %274, %cst_91 [1] : vector<8x32xf32> to vector<8xf32>
    %276 = vector.shape_cast %275 : vector<8xf32> to vector<8x1xf32>
    %cst_92 = arith.constant 3.200000e+01 : f32
    %277 = vector.broadcast %cst_92 : f32 to vector<8x1xf32>
    %278 = arith.divf %276, %277 : vector<8x1xf32>
    %cst_93 = arith.constant 9.99999974E-6 : f32
    %279 = vector.broadcast %cst_93 : f32 to vector<8x1xf32>
    %280 = arith.addf %278, %279 : vector<8x1xf32>
    %281 = math.rsqrt %280 : vector<8x1xf32>
    %282 = vector.broadcast %281 : vector<8x1xf32> to vector<8x32xf32>
    %283 = arith.mulf %273, %282 : vector<8x32xf32>
    %c0_94 = arith.constant 0 : index
    %c0_95 = arith.constant 0 : index
    %284 = vector.load %arg16[%c0_94, %c0_95] : memref<1x32xf32, #tpu.memory_space<vmem>>, vector<1x32xf32>
    %285 = vector.broadcast %284 : vector<1x32xf32> to vector<8x32xf32>
    %286 = arith.mulf %283, %285 : vector<8x32xf32>
    %c0_96 = arith.constant 0 : index
    %c0_97 = arith.constant 0 : index
    %287 = vector.load %arg17[%c0_96, %c0_97] : memref<1x32xf32, #tpu.memory_space<vmem>>, vector<1x32xf32>
    %288 = vector.broadcast %287 : vector<1x32xf32> to vector<8x32xf32>
    %289 = arith.addf %286, %288 : vector<8x32xf32>
    %c0_98 = arith.constant 0 : index
    %c0_99 = arith.constant 0 : index
    %c0_100 = arith.constant 0 : index
    %290 = vector.load %arg18[%c0_98, %c0_99, %c0_100] : memref<1x8x32xf32, #tpu.memory_space<vmem>>, vector<1x8x32xf32>
    %291 = vector.shape_cast %290 : vector<1x8x32xf32> to vector<8x32xf32>
    %292 = vector.shape_cast %289 : vector<8x32xf32> to vector<1x8x32xf32>
    tpu.vector_store %arg18[%c0_98, %c0_99, %c0_100], %292 {strides = array<i32>} : memref<1x8x32xf32, #tpu.memory_space<vmem>>, vector<1x8x32xf32>,
    return
  }
  func.func @transform_0(%arg0: i32) -> (i32, i32, i32) {
    %c0_i32 = arith.constant 0 : i32
    %c0_i32_0 = arith.constant 0 : i32
    %c0_i32_1 = arith.constant 0 : i32
    return %arg0, %c0_i32, %c0_i32_0 : i32, i32, i32
  }
  func.func @transform_1(%arg0: i32) -> (i32, i32) {
    %c0_i32 = arith.constant 0 : i32
    %c0_i32_0 = arith.constant 0 : i32
    %c0_i32_1 = arith.constant 0 : i32
    return %c0_i32, %c0_i32_0 : i32, i32
  }
  func.func @transform_2(%arg0: i32) -> (i32, i32) {
    %c0_i32 = arith.constant 0 : i32
    %c0_i32_0 = arith.constant 0 : i32
    %c0_i32_1 = arith.constant 0 : i32
    return %c0_i32, %c0_i32_0 : i32, i32
  }
  func.func @transform_3(%arg0: i32) -> (i32, i32) {
    %c0_i32 = arith.constant 0 : i32
    %c0_i32_0 = arith.constant 0 : i32
    %c0_i32_1 = arith.constant 0 : i32
    return %c0_i32, %c0_i32_0 : i32, i32
  }
  func.func @transform_4(%arg0: i32) -> (i32, i32) {
    %c0_i32 = arith.constant 0 : i32
    %c0_i32_0 = arith.constant 0 : i32
    %c0_i32_1 = arith.constant 0 : i32
    return %c0_i32, %c0_i32_0 : i32, i32
  }
  func.func @transform_5(%arg0: i32) -> (i32, i32) {
    %c0_i32 = arith.constant 0 : i32
    %c0_i32_0 = arith.constant 0 : i32
    %c0_i32_1 = arith.constant 0 : i32
    return %c0_i32, %c0_i32_0 : i32, i32
  }
  func.func @transform_6(%arg0: i32) -> (i32, i32) {
    %c0_i32 = arith.constant 0 : i32
    %c0_i32_0 = arith.constant 0 : i32
    %c0_i32_1 = arith.constant 0 : i32
    return %c0_i32, %c0_i32_0 : i32, i32
  }
  func.func @transform_7(%arg0: i32) -> (i32, i32) {
    %c0_i32 = arith.constant 0 : i32
    %c0_i32_0 = arith.constant 0 : i32
    %c0_i32_1 = arith.constant 0 : i32
    return %c0_i32, %c0_i32_0 : i32, i32
  }
  func.func @transform_8(%arg0: i32) -> (i32, i32) {
    %c0_i32 = arith.constant 0 : i32
    %c0_i32_0 = arith.constant 0 : i32
    %c0_i32_1 = arith.constant 0 : i32
    return %c0_i32, %c0_i32_0 : i32, i32
  }
  func.func @transform_9(%arg0: i32) -> (i32, i32) {
    %c0_i32 = arith.constant 0 : i32
    %c0_i32_0 = arith.constant 0 : i32
    %c0_i32_1 = arith.constant 0 : i32
    return %c0_i32, %c0_i32_0 : i32, i32
  }
  func.func @transform_10(%arg0: i32) -> (i32, i32) {
    %c0_i32 = arith.constant 0 : i32
    %c0_i32_0 = arith.constant 0 : i32
    %c0_i32_1 = arith.constant 0 : i32
    return %c0_i32, %c0_i32_0 : i32, i32
  }
  func.func @transform_11(%arg0: i32) -> (i32, i32) {
    %c0_i32 = arith.constant 0 : i32
    %c0_i32_0 = arith.constant 0 : i32
    %c0_i32_1 = arith.constant 0 : i32
    return %c0_i32, %c0_i32_0 : i32, i32
  }
  func.func @transform_12(%arg0: i32) -> (i32, i32) {
    %c0_i32 = arith.constant 0 : i32
    %c0_i32_0 = arith.constant 0 : i32
    %c0_i32_1 = arith.constant 0 : i32
    return %c0_i32, %c0_i32_0 : i32, i32
  }
  func.func @transform_13(%arg0: i32) -> (i32, i32) {
    %c0_i32 = arith.constant 0 : i32
    %c0_i32_0 = arith.constant 0 : i32
    %c0_i32_1 = arith.constant 0 : i32
    return %c0_i32, %c0_i32_0 : i32, i32
  }
  func.func @transform_14(%arg0: i32) -> (i32, i32) {
    %c0_i32 = arith.constant 0 : i32
    %c0_i32_0 = arith.constant 0 : i32
    %c0_i32_1 = arith.constant 0 : i32
    return %c0_i32, %c0_i32_0 : i32, i32
  }
  func.func @transform_15(%arg0: i32) -> (i32, i32) {
    %c0_i32 = arith.constant 0 : i32
    %c0_i32_0 = arith.constant 0 : i32
    %c0_i32_1 = arith.constant 0 : i32
    return %c0_i32, %c0_i32_0 : i32, i32
  }
  func.func @transform_16(%arg0: i32) -> (i32, i32) {
    %c0_i32 = arith.constant 0 : i32
    %c0_i32_0 = arith.constant 0 : i32
    %c0_i32_1 = arith.constant 0 : i32
    return %c0_i32, %c0_i32_0 : i32, i32
  }
  func.func @transform_17(%arg0: i32) -> (i32, i32, i32) {
    %c0_i32 = arith.constant 0 : i32
    %c0_i32_0 = arith.constant 0 : i32
    %c0_i32_1 = arith.constant 0 : i32
    return %arg0, %c0_i32, %c0_i32_0 : i32, i32, i32
  }
}

module attributes {stable_mosaic.version = 11 : i64} {
  func.func @_linear_kernel(%arg0: i32, %arg1: memref<16x32xf32, #tpu.memory_space<vmem>>, %arg2: memref<32x128xf32, #tpu.memory_space<vmem>>, %arg3: memref<1x128xf32, #tpu.memory_space<vmem>>, %arg4: memref<16x128xf32, #tpu.memory_space<vmem>>) attributes {dimension_semantics = [#tpu.dimension_semantics<parallel>], iteration_bounds = array<i64: 1>, scalar_prefetch = 0 : i64, scratch_operands = 0 : i64, tpu.core_type = #tpu.core_type<tc>, window_params = [{transform_indices = @transform_0, window_bounds = array<i64: 16, 32>}, {pipeline_mode = #tpu.pipeline_mode<synchronous>, transform_indices = @transform_1, window_bounds = array<i64: 32, 128>}, {pipeline_mode = #tpu.pipeline_mode<synchronous>, transform_indices = @transform_2, window_bounds = array<i64: 1, 128>}, {transform_indices = @transform_3, window_bounds = array<i64: 16, 128>}]} {
    %c0 = arith.constant 0 : index
    %c0_0 = arith.constant 0 : index
    %0 = vector.load %arg1[%c0, %c0_0] : memref<16x32xf32, #tpu.memory_space<vmem>>, vector<16x32xf32>
    %c0_1 = arith.constant 0 : index
    %c0_2 = arith.constant 0 : index
    %1 = vector.load %arg2[%c0_1, %c0_2] : memref<32x128xf32, #tpu.memory_space<vmem>>, vector<32x128xf32>
    %cst = arith.constant dense<0.000000e+00> : vector<16x128xf32>
    %2 = tpu.matmul %0, %1, %cst {dimension_numbers = #tpu.dot_dimension_numbers<[1], [0], [0], [1], [0, 0, 1, 1], [], []>} : vector<16x32xf32>, vector<32x128xf32>, vector<16x128xf32> -> vector<16x128xf32>
    %c0_3 = arith.constant 0 : index
    %c0_4 = arith.constant 0 : index
    %3 = vector.load %arg3[%c0_3, %c0_4] : memref<1x128xf32, #tpu.memory_space<vmem>>, vector<1x128xf32>
    %4 = vector.broadcast %3 : vector<1x128xf32> to vector<16x128xf32>
    %5 = arith.addf %2, %4 : vector<16x128xf32>
    %c0_5 = arith.constant 0 : index
    %c0_6 = arith.constant 0 : index
    %6 = vector.load %arg4[%c0_5, %c0_6] : memref<16x128xf32, #tpu.memory_space<vmem>>, vector<16x128xf32>
    tpu.vector_store %arg4[%c0_5, %c0_6], %5 {strides = array<i32>} : memref<16x128xf32, #tpu.memory_space<vmem>>, vector<16x128xf32>,
    return
  }
  func.func @transform_0(%arg0: i32) -> (i32, i32) {
    %c0_i32 = arith.constant 0 : i32
    %c0_i32_0 = arith.constant 0 : i32
    return %arg0, %c0_i32 : i32, i32
  }
  func.func @transform_1(%arg0: i32) -> (i32, i32) {
    %c0_i32 = arith.constant 0 : i32
    %c0_i32_0 = arith.constant 0 : i32
    %c0_i32_1 = arith.constant 0 : i32
    return %c0_i32, %c0_i32_0 : i32, i32
  }
  func.func @transform_2(%arg0: i32) -> (i32, i32) {
    %c0_i32 = arith.constant 0 : i32
    %c0_i32_0 = arith.constant 0 : i32
    %c0_i32_1 = arith.constant 0 : i32
    return %c0_i32, %c0_i32_0 : i32, i32
  }
  func.func @transform_3(%arg0: i32) -> (i32, i32) {
    %c0_i32 = arith.constant 0 : i32
    %c0_i32_0 = arith.constant 0 : i32
    return %arg0, %c0_i32 : i32, i32
  }
}

</mosaic_0001>

<bundles_post_ra>
// kernel: transformer_forward.4
= control target key start
LH: loop header
LB: loop body
LE: loop exit
PB: predicated region body
PF: predicated region fallthrough
CT: control target
= control target key end

     0   :  { %s523_s15 = smov 0   ;;  %s525_s16 = smov 0   ;;  %s568_s0 = inlined_call_operand.vmem [shape: f32[2,8,16], index: 0, kind: input, shape index: {}]   ;;  %s569_s1 = inlined_call_operand.vmem [shape: f32[16,32], index: 1, kind: input, shape index: {}]   ;;  %s570_s2 = inlined_call_operand.vmem [shape: f32[1,32], index: 2, kind: input, shape index: {}]   ;;  %s571_s3 = inlined_call_operand.vmem [shape: f32[8,32], index: 3, kind: input, shape index: {}]   ;;  %s572_s4 = inlined_call_operand.vmem [shape: f32[2,8,32], index: 4, kind: output, shape index: {}]  }
   0x1   :  { %s527_s17 = smov 0  }
   0x2 LB: > { %s26_s18 = sadd.s32 1, %s489_s16  ;;  %p424_p0 = scmp.ge.s32.totalorder %s493_s17, 1  ;;  %s493_s17 = sphi %s527_s17, %s14_s17   ;;  %s489_s16 = sphi %s525_s16, %s574_s16   ;;  %s485_s15 = sphi %s523_s15, %s573_s15  }
   0x3   : > { %p28_p1 = scmp.ge.s32.totalorder %s26_s18, 2  ;;  %p189_p2 = scmp.lt.s32.totalorder %s493_s17, 3 }
   0x5   : > { %s576_s18 = smov (%p28_p1, %s26_s18), 0  ;;  %p190_p3 = pnand %p424_p0, %p189_p2 }
   0x6   : > { %v242_v0 = vld [vmem:[%s569_s1] sm:$0xff] (!%p190_p3)  ;;  %v243_v1 = vld [vmem:[%s569_s1 + $0x8] sm:$0xff] (!%p190_p3)  ;;  %p223_p4 = scmp.lt.s32.totalorder (!%p190_p3), %s485_s15, 1  ;;  %v495_v2 = vmov (!%p190_p3), 0.0|0.0   ;;  %vm496_vm0 = vmmov (!%p190_p3), 0   ;;  %v497_v4 = vmov (!%p190_p3), 0.0  }
   0x7   : > { %193 = sbr.rel (%p190_p3) target bundleno = 235 (0xeb), region = 36  ;;  %441 = vmatprep.subr.bf16.mxu0 (!%p190_p3), %v495_v2  ;;  %v442_v3 = vpack.c.bf16 (!%p190_p3), %v243_v1, %v242_v0  ;;  %438 = vmatprep.mubr.msk.f32.mxu0 (!%p190_p3), %vm496_vm0, %v497_v4  ;;  %vm251_vm1 = vcmask (!%p190_p3), 130048   ;;  %v427_v6 = vld [vmem:[%s570_s2] ss:$0 sm:$0xff] (!%p190_p3)  ;;  %vm327_vm2 = vcmask (!%p190_p3), 261120  }
   0x8   : > { %v325_v8 = vld [vmem:[%s571_s3] sm:$0xff] (!%p190_p3) }
   0x9   : > { %443 = vmatpush3.bf16.msra.mxu0 (!%p190_p3), %v442_v3 }
   0xe   : > { %s578_s15 = smov (!%p223_p4, %s485_s15), 1 }
   0xf   : > { %s425_s23 = sshll.u32 %s578_s15, 3 }
  0x10   : > { %s229_s26 = scalar_lea.vmem %s568_s0, %s425_s23  ;;  %s240_s7 = scalar_lea.vmem %s572_s4, %s425_s23 }
  0x11   : > { %v241_v5 = vld [vmem:[%s229_s26] sm:$0xff] }
  0x12   : > { %439 = vmatmul.mubr.msk.f32.vlgmr.msra.gmra.mrb[0].mxu0 %vm251_vm1, %v241_v5 }
  0xe5   : > { %v321_v7 = vpop.f32.mrb[0].mxu0 }
  0xe6   : > { %v322_v9 = vadd.f32 %v427_v6, %v321_v7  ;;  %v440_v10 = vpop.f32.mrb[1].mxu0 }
  0xe8   : > { %v326_v11 = vadd.f32 %v325_v8, %v322_v9 }
  0xea   : > { %328 = vst.msk [vmem:[%s240_s7] sm:$0xff] %vm327_vm2, %v326_v11 }
  0xeb PF: > { %s14_s17 = sadd.s32 1, %s493_s17   ;;  %s573_s15 = smov %s489_s16 }
  0xec   : > { %p11_p5 = scmp.ge.s32.totalorder %s14_s17, 4   ;;  %s574_s16 = smov %s576_s18 }
  0xee   :  { %13 = sbr.rel (!%p11_p5) target bundleno = 2 (0x2), region = 69 }

// kernel: transformer_forward.7
= control target key start
LH: loop header
LB: loop body
LE: loop exit
PB: predicated region body
PF: predicated region fallthrough
CT: control target
= control target key end

     0   :  { %vm27_vm0 = vcmask 261120   ;;  %s190_s1 = inlined_call_operand.vmem [shape: f32[32,128], index: 1, kind: input, shape index: {}]   ;;  %s191_s0 = inlined_call_operand.vmem [shape: f32[16,32], index: 0, kind: input, shape index: {}]   ;;  %s192_s2 = inlined_call_operand.vmem [shape: f32[1,128], index: 2, kind: input, shape index: {}]   ;;  %s193_s3 = inlined_call_operand.vmem [shape: f32[16,128], index: 3, kind: output, shape index: {}]  }
   0x1   :  { %v16_v0 = vld [vmem:[%s190_s1] sm:$0xff]  ;;  %v17_v1 = vld [vmem:[%s190_s1 + $0x8] sm:$0xff]  ;;  %v18_v2 = vld [vmem:[%s190_s1 + $0x10] sm:$0xff] }
   0x2   :  { %v135_v3 = vpack.c.bf16 %v17_v1, %v16_v0  ;;  %v19_v4 = vld [vmem:[%s190_s1 + $0x18] sm:$0xff]  ;;  %v14_v5 = vld [vmem:[%s191_s0] sm:$0xff]  ;;  %v15_v7 = vld [vmem:[%s191_s0 + $0x8] sm:$0xff] }
   0x3   :  { %v139_v6 = vpack.c.bf16 %v19_v4, %v18_v2  ;;  %132 = vmatprep.mubr.msk.f32.mxu0 %vm27_vm0, %v14_v5  ;;  %v115_v8 = vld [vmem:[%s192_s2] ss:$0 sm:$0xff] }
   0x4   :  { %136 = vmatprep.subr.bf16.mxu0 %v135_v3 }
   0x5   :  { %138 = vmatpush3.bf16.msra.mxu0 %v135_v3 }
   0x6   :  { %140 = vmatprep.subr.bf16.mxu0 %v139_v6 }
   0x9   :  { %142 = vmatpush3.bf16.msra.mxu0 %v139_v6 }
   0xc   :  { %133 = vmatmul.mubr.msk.f32.vlgmr.msra.gmra.mrb[0].mxu0 %vm27_vm0, %v15_v7 }
  0xdf   :  { %v134_v9 = vpop.f32.mrb[0].mxu0 }
  0xe0   :  { %v106_v10 = vadd.f32 %v134_v9, %v115_v8  ;;  %v100_v11 = vpop.f32.mrb[1].mxu0 }
  0xe1   :  { %v101_v12 = vadd.f32 %v115_v8, %v100_v11 }
  0xe2   :  { %110 = vst [vmem:[%s193_s3 + $0x8] sm:$0xff] %v106_v10 }
  0xe3   :  { %109 = vst [vmem:[%s193_s3] sm:$0xff] %v101_v12 }

// kernel: transformer_forward.5
= control target key start
LH: loop header
LB: loop body
LE: loop exit
PB: predicated region body
PF: predicated region fallthrough
CT: control target
= control target key end

     0   :  { %s3017_s24 = smov 0   ;;  %s3404_s0 = inlined_call_operand.vmem [shape: f32[2,8,32], index: 0, kind: input, shape index: {}]   ;;  %s3405_s1 = inlined_call_operand.vmem [shape: f32[32,32], index: 1, kind: input, shape index: {}]   ;;  %s3406_s2 = inlined_call_operand.vmem [shape: f32[32,32], index: 2, kind: input, shape index: {}]   ;;  %s3407_s3 = inlined_call_operand.vmem [shape: f32[32,32], index: 3, kind: input, shape index: {}]   ;;  %s3408_s4 = inlined_call_operand.vmem [shape: f32[1,32], index: 4, kind: input, shape index: {}]   ;;  %s3409_s5 = inlined_call_operand.vmem [shape: f32[1,32], index: 5, kind: input, shape index: {}]   ;;  %s3410_s6 = inlined_call_operand.vmem [shape: f32[1,32], index: 6, kind: input, shape index: {}]   ;;  %s3411_s7 = inlined_call_operand.vmem [shape: f32[32,32], index: 7, kind: input, shape index: {}]   ;;  %s3412_s8 = inlined_call_operand.vmem [shape: f32[1,32], index: 8, kind: input, shape index: {}]   ;;  %s3413_s9 = inlined_call_operand.vmem [shape: f32[1,32], index: 9, kind: input, shape index: {}]   ;;  %s3414_s10 = inlined_call_operand.vmem [shape: f32[1,32], index: 10, kind: input, shape index: {}]   ;;  %s3415_s11 = inlined_call_operand.vmem [shape: f32[32,128], index: 11, kind: input, shape index: {}]   ;;  %s3416_s12 = inlined_call_operand.vmem [shape: f32[1,128], index: 12, kind: input, shape index: {}]   ;;  %s3417_s13 = inlined_call_operand.vmem [shape: f32[128,32], index: 13, kind: input, shape index: {}]   ;;  %s3418_s14 = inlined_call_operand.vmem [shape: f32[1,32], index: 14, kind: input, shape index: {}]   ;;  %s3419_s15 = inlined_call_operand.vmem [shape: f32[1,32], index: 15, kind: input, shape index: {}]   ;;  %s3420_s16 = inlined_call_operand.vmem [shape: f32[1,32], index: 16, kind: input, shape index: {}]   ;;  %s3421_s17 = inlined_call_operand.vmem [shape: f32[2,8,32], index: 17, kind: output, shape index: {}]  }
   0x1   :  { %3423 = sst [smem:[#allocation2_spill]] %s3404_s0 }
   0x2   :  { %3424 = sst [smem:[#allocation3_spill]] %s3405_s1 }
   0x3 LB: > { %s2501_s25 = sadd.s32 4294967295, %s2922_s24   ;;  %p2505_p0 = scmp.ge.s32.totalorder %s2922_s24, 1  ;;  %s2922_s24 = sphi %s3017_s24, %s27_s24  }
   0x4   : > { %p486_p1 = scmp.lt.s32.totalorder %s2922_s24, 3 }
   0x6   : > { %p487_p2 = pnand %p2505_p0, %p486_p1 }
   0x7   : > { %s3425_s28 = sld [smem:[#allocation3_spill]] (!%p487_p2)  ;;  %v2924_v3 = vmov (!%p487_p2), 0.0|0.0   ;;  %vm2925_vm0 = vmmov (!%p487_p2), 0   ;;  %v2926_v6 = vmov (!%p487_p2), 0.0   ;;  %p536_p3 = scmp.lt.s32.totalorder (!%p487_p2), %s2501_s25, 1  ;;  %v630_v8 = vld [vmem:[%s3406_s2] sm:$0xff] (!%p487_p2)  ;;  %v792_v21 = vlaneseq (!%p487_p2) }
   0x8   : > { %490 = sbr.rel (%p487_p2) target bundleno = 2321 (0x911), region = 88  ;;  %2801 = vmatprep.subr.bf16.mxu0 (!%p487_p2), %v2924_v3  ;;  %2639 = vmatprep.mubr.msk.f32.mxu0 (!%p487_p2), %vm2925_vm0, %v2926_v6  ;;  %v631_v9 = vld [vmem:[%s3406_s2 + $0x8] sm:$0xff] (!%p487_p2)  ;;  %s3426_s0 = sld [smem:[#allocation2_spill]] (!%p487_p2)  ;;  %vm556_vm1 = vcmask (!%p487_p2), 261120   ;;  %v632_v12 = vld [vmem:[%s3406_s2 + $0x10] sm:$0xff] (!%p487_p2)  ;;  %v633_v13 = vld [vmem:[%s3406_s2 + $0x18] sm:$0xff] (!%p487_p2) }
   0x9   : > { %2669 = vmatprep.subr.mxu1 (!%p487_p2), %v2926_v6  ;;  %2671 = vmatprep.mubr.msk.f32.mxu1 (!%p487_p2), %vm2925_vm0, %v2926_v6  ;;  %v2808_v11 = vpack.c.bf16 (!%p487_p2), %v631_v9, %v630_v8  ;;  %v2811_v14 = vpack.c.bf16 (!%p487_p2), %v633_v13, %v632_v12  ;;  %v711_v15 = vld [vmem:[%s3407_s3] sm:$0xff] (!%p487_p2)  ;;  %v712_v16 = vld [vmem:[%s3407_s3 + $0x8] sm:$0xff] (!%p487_p2)  ;;  %v713_v18 = vld [vmem:[%s3407_s3 + $0x10] sm:$0xff] (!%p487_p2)  ;;  %v3095_v22 = vand.u32 (!%p487_p2), 127, %v792_v21 }
   0xa   : > { %v2814_v17 = vpack.c.bf16 (!%p487_p2), %v712_v16, %v711_v15  ;;  %v714_v19 = vld [vmem:[%s3407_s3 + $0x18] sm:$0xff] (!%p487_p2)  ;;  %v2510_v25 = vld [vmem:[%s3409_s5] ss:$0 sm:$0xff] (!%p487_p2) }
   0xb   : > { %v2817_v20 = vpack.c.bf16 (!%p487_p2), %v714_v19, %v713_v18  ;;  %vm890_vm2 = vcmp.ge.s32.totalorder (!%p487_p2), %v3095_v22, 4  ;;  %vm891_vm3 = vcmp.lt.s32.totalorder (!%p487_p2), %v3095_v22, 8  ;;  %vm795_vm4 = vcmp.lt.s32.totalorder (!%p487_p2), %v3095_v22, 4  ;;  %v2508_v31 = vld [vmem:[%s3408_s4] ss:$0 sm:$0xff] (!%p487_p2) }
   0xc   : > { %vm892_vm5 = vmand (!%p487_p2), %vm890_vm2, %vm891_vm3  ;;  %vm1128_vm6 = vcmp.ge.s32.totalorder (!%p487_p2), %v3095_v22, 8  ;;  %vm1129_vm7 = vcmp.lt.s32.totalorder (!%p487_p2), %v3095_v22, 12  ;;  %v3106_v27 = vsel (!%p487_p2), %vm795_vm4, 1.0, %v2926_v6  ;;  %vm1294_vm9 = vcmp.ge.s32.totalorder (!%p487_p2), %v3095_v22, 12  ;;  %v2512_v49 = vld [vmem:[%s3410_s6] ss:$0 sm:$0xff] (!%p487_p2) }
   0xd   : > { %v545_v0 = vld [vmem:[%s3425_s28] sm:$0xff] (!%p487_p2)  ;;  %v546_v1 = vld [vmem:[%s3425_s28 + $0x8] sm:$0xff] (!%p487_p2)  ;;  %v547_v2 = vld [vmem:[%s3425_s28 + $0x10] sm:$0xff] (!%p487_p2)  ;;  %v3109_v28 = vsel (!%p487_p2), %vm892_vm5, 1.0, %v2926_v6  ;;  %vm1295_vm10 = vcmp.lt.s32.totalorder (!%p487_p2), %v3095_v22, 16  ;;  %vm1460_vm12 = vcmp.ge.s32.totalorder (!%p487_p2), %v3095_v22, 16 }
   0xe   : > { %v2802_v4 = vpack.c.bf16 (!%p487_p2), %v546_v1, %v545_v0  ;;  %v548_v5 = vld [vmem:[%s3425_s28 + $0x18] sm:$0xff] (!%p487_p2)  ;;  %vm1130_vm8 = vmand (!%p487_p2), %vm1128_vm6, %vm1129_vm7  ;;  %vm1461_vm13 = vcmp.lt.s32.totalorder (!%p487_p2), %v3095_v22, 20  ;;  %vm1626_vm15 = vcmp.ge.s32.totalorder (!%p487_p2), %v3095_v22, 20  ;;  %vm1627_vm2 = vcmp.lt.s32.totalorder (!%p487_p2), %v3095_v22, 24 }
   0xf   : > { %v2805_v7 = vpack.c.bf16 %v548_v5, %v547_v2  ;;  %s3428_s25 = smov (!%p536_p3, %s2501_s25), 1  ;;  %v3119_v34 = vsel %vm1130_vm8, 1.0, %v2926_v6  ;;  %vm1296_vm11 = vmand %vm1294_vm9, %vm1295_vm10  ;;  %vm1792_vm4 = vcmp.ge.s32.totalorder %v3095_v22, 24  ;;  %vm1793_vm5 = vcmp.lt.s32.totalorder %v3095_v22, 28 }
  0x10   : > { %2803 = vmatpush3.bf16.msra.mxu0 %v2802_v4  ;;  %s2506_s26 = sshll.u32 %s3428_s25, 3  ;;  %v3131_v37 = vsel %vm1296_vm11, 1.0, %v2926_v6  ;;  %vm1462_vm14 = vmand %vm1460_vm12, %vm1461_vm13  ;;  %vm1958_vm7 = vcmp.ge.s32.totalorder %v3095_v22, 28  ;;  %vm1959_vm8 = vcmp.lt.s32.totalorder %v3095_v22, 32  ;;  %vm877_vm10 = vcmask 64512  }
  0x11   : > { %2804 = vmatprep.subr.bf16.mxu0 %v2924_v3  ;;  %s539_s30 = scalar_lea.vmem %s3426_s0, %s2506_s26  ;;  %v3144_v39 = vsel %vm1462_vm14, 1.0, %v2926_v6  ;;  %vm1628_vm3 = vmand %vm1626_vm15, %vm1627_vm2  ;;  %s543_s22 = scalar_lea.vmem %s3421_s17, %s2506_s26 }
  0x12   : > { %v3058_v10 = vld [vmem:[%s539_s30] sm:$0xff]  ;;  %v3155_v41 = vsel %vm1628_vm3, 1.0, %v2926_v6  ;;  %vm1794_vm6 = vmand %vm1792_vm4, %vm1793_vm5 }
  0x13   : > { %v3166_v43 = vsel %vm1794_vm6, 1.0, %v2926_v6  ;;  %vm1960_vm9 = vmand %vm1958_vm7, %vm1959_vm8 }
  0x14   : > { %2806 = vmatpush3.bf16.msra.mxu0 %v2805_v7  ;;  %v3175_v45 = vsel %vm1960_vm9, 1.0, %v2926_v6 }
  0x15   : > { %2807 = vmatprep.subr.bf16.mxu0 %v2924_v3 }
  0x17   : > { %2640 = vmatmul.mubr.msk.f32.vlgmr.msra.gmra.mrb[0].mxu0 %vm556_vm1, %v3058_v10 }
  0x18   : > { %2809 = vmatpush3.bf16.msra.mxu0 %v2808_v11  ;;  %2650 = vmatprep.mubr.msk.f32.mxu0 %vm2925_vm0, %v2926_v6 }
  0x19   : > { %2810 = vmatprep.subr.bf16.mxu0 %v2924_v3 }
  0x1c   : > { %2812 = vmatpush3.bf16.msra.mxu0 %v2811_v14 }
  0x1d   : > { %2813 = vmatprep.subr.bf16.mxu0 %v2924_v3 }
  0x1f   : > { %2651 = vmatmul.mubr.msk.f32.vlgmr.msra.gmra.mrb[2].mxu0 %vm556_vm1, %v3058_v10 }
  0x20   : > { %2661 = vmatprep.mubr.msk.f32.mxu0 %vm2925_vm0, %v2926_v6  ;;  %2815 = vmatpush3.bf16.msra.mxu0 %v2814_v17 }
  0x21   : > { %2816 = vmatprep.subr.bf16.mxu0 %v2924_v3 }
  0x24   : > { %2818 = vmatpush3.bf16.msra.mxu0 %v2817_v20 }
  0x25   : > { %2664 = vmatprep.subr.mxu0 %v2926_v6 }
  0x27   : > { %2662 = vmatmul.mubr.msk.f32.vlgmr.msra.gmra.mrb[4].mxu0 %vm556_vm1, %v3058_v10 }
  0x28   : > { %2666 = vmatprep.mubr.msk.f32.mxu0 %vm2925_vm0, %v2926_v6 }
  0xea   : > { %v626_v23 = vpop.f32.mrb[0].mxu0 }
  0xeb   : > { %v2641_v24 = vpop.f32.mrb[1].mxu0  ;;  %v627_v35 = vadd.f32 %v2508_v31, %v626_v23 }
  0xf2   : > { %v707_v26 = vpop.f32.mrb[2].mxu0 }
  0xf3   : > { %v708_v29 = vadd.f32 %v2510_v25, %v707_v26  ;;  %v2652_v30 = vpop.f32.mrb[3].mxu0 }
  0xf5   : > { %v799_v32 = vmul.f32 %v3106_v27, %v708_v29  ;;  %v895_v33 = vmul.f32 %v3109_v28, %v708_v29  ;;  %v1133_v36 = vmul.f32 %v3119_v34, %v708_v29  ;;  %v1299_v38 = vmul.f32 %v3131_v37, %v708_v29 }
  0xf6   : > { %v1465_v40 = vmul.f32 %v3144_v39, %v708_v29  ;;  %v1631_v42 = vmul.f32 %v3155_v41, %v708_v29  ;;  %v1797_v44 = vmul.f32 %v3166_v43, %v708_v29  ;;  %v1963_v46 = vmul.f32 %v3175_v45, %v708_v29 }
  0xf7   : > { %2665 = vmatpush3.xpose.msk.msra.mxu0 %vm556_vm1, %v799_v32  ;;  %2670 = vmatpush3.xpose.msk.msra.mxu1 %vm556_vm1, %v895_v33 }
  0xf8   : > { %2684 = vmatprep.subr.mxu1 %v2926_v6  ;;  %2674 = vmatprep.subr.mxu0 %v2926_v6 }
  0xfa   : > { %2667 = vmatmul.mubr.msk.f32.vlgmr.msra.gmra.mrb[6].mxu0 %vm556_vm1, %v627_v35  ;;  %2672 = vmatmul.mubr.msk.f32.vlgmr.msra.gmra.mrb[0].mxu1 %vm556_vm1, %v627_v35  ;;  %v788_v47 = vpop.f32.mrb[4].mxu0 }
  0xfb   : > { %2685 = vmatpush3.xpose.msk.msra.mxu1 %vm556_vm1, %v1133_v36  ;;  %2686 = vmatprep.mubr.msk.f32.mxu1 %vm2925_vm0, %v2926_v6  ;;  %v2663_v48 = vpop.f32.mrb[5].mxu0  ;;  %v3193_v50 = vadd.f32 %v2512_v49, %v788_v47 }
  0xfc   : > { %2694 = vmatprep.subr.mxu1 %v2926_v6  ;;  %2676 = vmatprep.mubr.msk.f32.mxu0 %vm2925_vm0, %v2926_v6 }
  0xfd   : > { %v981_v51 = vmul.f32 %v3109_v28, %v3193_v50 }
  0xfe   : > { %2687 = vmatmul.mubr.msk.f32.vlgmr.msra.gmra.mrb[2].mxu1 %vm556_vm1, %v627_v35 }
  0xff   : > { %2695 = vmatpush3.xpose.msk.msra.mxu1 %vm556_vm1, %v1299_v38  ;;  %2696 = vmatprep.mubr.msk.f32.mxu1 %vm2925_vm0, %v2926_v6 }
 0x100   : > { %2704 = vmatprep.subr.mxu1 %v2926_v6  ;;  %2675 = vmatpush3.msra.mxu0 %v981_v51 }
 0x101   : > { %2679 = vmatprep.subr.mxu0 %v2926_v6 }
 0x102   : > { %2697 = vmatmul.mubr.msk.f32.vlgmr.msra.gmra.mrb[4].mxu1 %vm556_vm1, %v627_v35 }
 0x103   : > { %2705 = vmatpush3.xpose.msk.msra.mxu1 %vm556_vm1, %v1465_v40  ;;  %2706 = vmatprep.mubr.msk.f32.mxu1 %vm2925_vm0, %v2926_v6 }
 0x104   : > { %2714 = vmatprep.subr.mxu1 %v2926_v6 }
 0x106   : > { %2707 = vmatmul.mubr.msk.f32.vlgmr.msra.gmra.mrb[6].mxu1 %vm556_vm1, %v627_v35 }
 0x107   : > { %2715 = vmatpush3.xpose.msk.msra.mxu1 %vm556_vm1, %v1631_v42  ;;  %2716 = vmatprep.mubr.msk.f32.mxu1 %vm2925_vm0, %v2926_v6 }
 0x108   : > { %2724 = vmatprep.subr.mxu1 %v2926_v6 }
 0x10a   : > { %2717 = vmatmul.mubr.msk.f32.vlgmr.msra.gmra.mrb[8].mxu1 %vm556_vm1, %v627_v35 }
 0x10b   : > { %2725 = vmatpush3.xpose.msk.msra.mxu1 %vm556_vm1, %v1797_v44  ;;  %2726 = vmatprep.mubr.msk.f32.mxu1 %vm2925_vm0, %v2926_v6 }
 0x10c   : > { %2734 = vmatprep.subr.mxu1 %v2926_v6 }
 0x10e   : > { %2727 = vmatmul.mubr.msk.f32.vlgmr.msra.gmra.mrb[10].mxu1 %vm556_vm1, %v627_v35 }
 0x10f   : > { %2735 = vmatpush3.xpose.msk.msra.mxu1 %vm556_vm1, %v1963_v46  ;;  %2736 = vmatprep.mubr.msk.f32.mxu1 %vm2925_vm0, %v2926_v6 }
 0x110   : > { %2819 = vmatprep.subr.bf16.mxu1 %v2924_v3 }
 0x112   : > { %2737 = vmatmul.mubr.msk.f32.vlgmr.msra.gmra.mrb[12].mxu1 %vm556_vm1, %v627_v35 }
 0x113   : > { %2752 = vmatprep.mubr.msk.f32.mxu1 %vm2925_vm0, %v2926_v6 }
 0x1cd   : > { %v872_v52 = vpop.f32.mrb[6].mxu0  ;;  %v965_v53 = vpop.f32.mrb[0].mxu1 }
 0x1ce   : > { %v969_v54 = vmul.f32 0.5, %v965_v53  ;;  %v2668_v55 = vpop.f32.mrb[7].mxu0  ;;  %v2673_v56 = vpop.f32.mrb[1].mxu1  ;;  %v876_v57 = vmul.f32 0.5, %v872_v52 }
 0x1d0   : > { %v970_v58 = vsel %vm877_vm10, %v969_v54, -inf  ;;  %v878_v63 = vsel %vm877_vm10, %v876_v57, -inf }
 0x1d1   : > { %971 = vmax.xlane.f32.xlu0 %v970_v58  ;;  %v1203_v59 = vpop.f32.mrb[2].mxu1 }
 0x1d2   : > { %v1207_v60 = vmul.f32 0.5, %v1203_v59  ;;  %v2688_v61 = vpop.f32.mrb[3].mxu1 }
 0x1d4   : > { %v1208_v62 = vsel %vm877_vm10, %v1207_v60, -inf }
 0x1d5   : > { %1209 = vmax.xlane.f32.xlu1 %v1208_v62  ;;  %v1369_v0 = vpop.f32.mrb[4].mxu1  ;;  %879 = vmax.xlane.f32.xlu0 %v878_v63 }
 0x1d6   : > { %v1373_v1 = vmul.f32 0.5, %v1369_v0  ;;  %v2698_v2 = vpop.f32.mrb[5].mxu1 }
 0x1d8   : > { %v1374_v4 = vsel %vm877_vm10, %v1373_v1, -inf }
 0x1d9   : > { %1375 = vmax.xlane.f32.xlu1 %v1374_v4  ;;  %v1535_v5 = vpop.f32.mrb[6].mxu1 }
 0x1da   : > { %v1539_v7 = vmul.f32 0.5, %v1535_v5  ;;  %v2708_v8 = vpop.f32.mrb[7].mxu1 }
 0x1dc   : > { %v1540_v9 = vsel %vm877_vm10, %v1539_v7, -inf }
 0x1dd   : > { %v1701_v11 = vpop.f32.mrb[8].mxu1  ;;  %1541 = vmax.xlane.f32.xlu0 %v1540_v9  ;;  %v2124_v9 = vld [vmem:[%s3411_s7] sm:$0xff] }
 0x1de   : > { %v1705_v12 = vmul.f32 0.5, %v1701_v11  ;;  %v2718_v13 = vpop.f32.mrb[9].mxu1  ;;  %v2125_v11 = vld [vmem:[%s3411_s7 + $0x8] sm:$0xff] }
 0x1df   : > { %v2820_v13 = vpack.c.bf16 %v2125_v11, %v2124_v9  ;;  %v2329_v9 = vld [vmem:[%s3417_s13 + $0x28] sm:$0xff] }
 0x1e0   : > { %v1706_v14 = vsel %vm877_vm10, %v1705_v12, -inf }
 0x1e1   : > { %1707 = vmax.xlane.f32.xlu1 %v1706_v14  ;;  %v1867_v15 = vpop.f32.mrb[10].mxu1  ;;  %v2127_v14 = vld [vmem:[%s3411_s7 + $0x18] sm:$0xff]  ;;  %2821 = vmatpush3.bf16.msra.mxu1 %v2820_v13 }
 0x1e2   : > { %v1871_v16 = vmul.f32 0.5, %v1867_v15  ;;  %v2728_v17 = vpop.f32.mrb[11].mxu1  ;;  %2822 = vmatprep.subr.bf16.mxu1 %v2924_v3  ;;  %v2331_v13 = vld [vmem:[%s3417_s13 + $0x38] sm:$0xff] }
 0x1e4   : > { %v1872_v18 = vsel %vm877_vm10, %v1871_v16, -inf }
 0x1e5   : > { %v2033_v19 = vpop.f32.mrb[12].mxu1  ;;  %1873 = vmax.xlane.f32.xlu0 %v1872_v18 }
 0x1e6   : > { %v2037_v20 = vmul.f32 0.5, %v2033_v19  ;;  %v2738_v21 = vpop.f32.mrb[13].mxu1 }
 0x1e7   : > { %v889_v21 = vmul.f32 %v3106_v27, %v3193_v50 }
 0x1e8   : > { %v2038_v22 = vsel %vm877_vm10, %v2037_v20, -inf }
 0x1e9   : > { %2039 = vmax.xlane.f32.xlu1 %v2038_v22 }
 0x25e   : > { %v972_v23 = vpop.xlane.xlu0 %971 }
 0x25f   : > { %v973_v24 = vsub.f32 %v969_v54, %v972_v23 }
 0x261   : > { %v974_v25 = vmul.f32 1.442695, %v973_v24 }
 0x262   : > { %v1210_v26 = vpop.xlane.xlu1 %1209  ;;  %v880_v28 = vpop.xlane.xlu0 %879 }
 0x263   : > { %2880 = vpow2.f32 %v974_v25  ;;  %v1211_v29 = vsub.f32 %v1207_v60, %v1210_v26  ;;  %v881_v30 = vsub.f32 %v876_v57, %v880_v28  ;;  %v1219_v25 = vmul.f32 %v3119_v34, %v3193_v50 }
 0x265   : > { %v1212_v31 = vmul.f32 1.442695, %v1211_v29  ;;  %v882_v32 = vmul.f32 1.442695, %v881_v30  ;;  %v1385_v29 = vmul.f32 %v3131_v37, %v3193_v50 }
 0x266   : > { %v1376_v33 = vpop.xlane.xlu1 %1375 }
 0x267   : > { %2882 = vpow2.f32 %v1212_v31  ;;  %v1377_v35 = vsub.f32 %v1373_v1, %v1376_v33 }
 0x268   : > { %2884 = vpow2.f32 %v882_v32  ;;  %v1551_v32 = vmul.f32 %v3144_v39, %v3193_v50 }
 0x269   : > { %v1378_v36 = vmul.f32 1.442695, %v1377_v35 }
 0x26a   : > { %v1542_v38 = vpop.xlane.xlu0 %1541 }
 0x26b   : > { %2886 = vpow2.f32 %v1378_v36  ;;  %v1543_v40 = vsub.f32 %v1539_v7, %v1542_v38  ;;  %v1717_v36 = vmul.f32 %v3155_v41, %v3193_v50 }
 0x26d   : > { %v2881_v42 = vpop.eup %2880  ;;  %v1544_v44 = vmul.f32 1.442695, %v1543_v40 }
 0x26e   : > { %v1708_v46 = vpop.xlane.xlu1 %1707  ;;  %v976_v47 = vsel %vm877_vm10, %v2881_v42, 0.0 }
 0x26f   : > { %2888 = vpow2.f32 %v1544_v44  ;;  %v1709_v48 = vsub.f32 %v1705_v12, %v1708_v46  ;;  %977 = vadd.xlane.f32.xlu0 %v976_v47  ;;  %v2126_v12 = vld [vmem:[%s3411_s7 + $0x10] sm:$0xff]  ;;  %v2049_v46 = vmul.f32 %v3175_v45, %v3193_v50  ;;  %v2546_v45 = vld [vmem:[%s3412_s8] ss:$0 sm:$0xff] }
 0x270   : > { %v2823_v15 = vpack.c.bf16 %v2127_v14, %v2126_v12  ;;  %v2330_v12 = vld [vmem:[%s3417_s13 + $0x30] sm:$0xff] }
 0x271   : > { %v3207_v49 = vpop.eup %2882  ;;  %v1710_v51 = vmul.f32 1.442695, %v1709_v48  ;;  %v2841_v14 = vpack.c.bf16 %v2331_v13, %v2330_v12 }
 0x272   : > { %v2885_v52 = vpop.eup %2884  ;;  %v1874_v53 = vpop.xlane.xlu0 %1873  ;;  %v1214_v54 = vsel %vm877_vm10, %v3207_v49, 0.0  ;;  %2824 = vmatpush3.bf16.msra.mxu1 %v2823_v15  ;;  %v2332_v15 = vld [vmem:[%s3417_s13 + $0x40] sm:$0xff] }
 0x273   : > { %2890 = vpow2.f32 %v1710_v51  ;;  %v1875_v55 = vsub.f32 %v1871_v16, %v1874_v53  ;;  %1215 = vadd.xlane.f32.xlu0 %v1214_v54  ;;  %v884_v56 = vsel %vm877_vm10, %v2885_v52, 0.0  ;;  %2831 = vmatprep.subr.bf16.mxu1 %v2924_v3 }
 0x274   : > { %885 = vadd.xlane.f32.xlu1 %v884_v56 }
 0x275   : > { %v3212_v57 = vpop.eup %2886  ;;  %v1876_v58 = vmul.f32 1.442695, %v1875_v55 }
 0x276   : > { %v2040_v59 = vpop.xlane.xlu1 %2039  ;;  %v1380_v60 = vsel %vm877_vm10, %v3212_v57, 0.0 }
 0x277   : > { %2892 = vpow2.f32 %v1876_v58  ;;  %v2041_v61 = vsub.f32 %v2037_v20, %v2040_v59 }
 0x278   : > { %1381 = vadd.xlane.f32.xlu1 %v1380_v60  ;;  %v2240_v60 = vld [vmem:[%s3415_s11 + $0x8] sm:$0xff] }
 0x279   : > { %v3216_v62 = vpop.eup %2888  ;;  %v2042_v63 = vmul.f32 1.442695, %v2041_v61 }
 0x27a   : > { %v1546_v0 = vsel %vm877_vm10, %v3216_v62, 0.0 }
 0x27b   : > { %2894 = vpow2.f32 %v2042_v63  ;;  %1547 = vadd.xlane.f32.xlu0 %v1546_v0  ;;  %v2324_v0 = vld [vmem:[%s3417_s13] sm:$0xff] }
 0x27d   : > { %v3220_v1 = vpop.eup %2890 }
 0x27e   : > { %v1712_v2 = vsel %vm877_vm10, %v3220_v1, 0.0 }
 0x27f   : > { %1713 = vadd.xlane.f32.xlu1 %v1712_v2  ;;  %v2326_v2 = vld [vmem:[%s3417_s13 + $0x10] sm:$0xff] }
 0x281   : > { %v3224_v4 = vpop.eup %2892 }
 0x282   : > { %v1878_v5 = vsel %vm877_vm10, %v3224_v4, 0.0 }
 0x283   : > { %1879 = vadd.xlane.f32.xlu0 %v1878_v5  ;;  %v2327_v5 = vld [vmem:[%s3417_s13 + $0x18] sm:$0xff] }
 0x285   : > { %v3228_v7 = vpop.eup %2894 }
 0x286   : > { %v2044_v8 = vsel %vm877_vm10, %v3228_v7, 0.0 }
 0x287   : > { %2045 = vadd.xlane.f32.xlu1 %v2044_v8  ;;  %v2328_v8 = vld [vmem:[%s3417_s13 + $0x20] sm:$0xff] }
 0x288   : > { %v2838_v11 = vpack.c.bf16 %v2329_v9, %v2328_v8 }
 0x2fc   : > { %v978_v16 = vpop.xlane.xlu0 %977 }
 0x2fd   : > { %2896 = vrcp.f32 %v978_v16  ;;  %v2333_v16 = vld [vmem:[%s3417_s13 + $0x48] sm:$0xff] }
 0x300   : > { %v1216_v20 = vpop.xlane.xlu0 %1215 }
 0x301   : > { %v886_v17 = vpop.xlane.xlu1 %885 }
 0x302   : > { %2898 = vrcp.f32 %v886_v17  ;;  %v2844_v17 = vpack.c.bf16 %v2333_v16, %v2332_v15 }
 0x303   : > { %2900 = vrcp.f32 %v1216_v20 }
 0x305   : > { %v1382_v24 = vpop.xlane.xlu1 %1381 }
 0x306   : > { %2902 = vrcp.f32 %v1382_v24 }
 0x307   : > { %v2897_v18 = vpop.eup %2896 }
 0x308   : > { %v980_v19 = vmul.f32 %v2897_v18, %v2881_v42  ;;  %v1548_v28 = vpop.xlane.xlu0 %1547  ;;  %v1883_v42 = vmul.f32 %v3166_v43, %v3193_v50  ;;  %v2334_v18 = vld [vmem:[%s3417_s13 + $0x50] sm:$0xff] }
 0x309   : > { %2904 = vrcp.f32 %v1548_v28  ;;  %v2548_v28 = vld [vmem:[%s3413_s9] ss:$0 sm:$0xff] }
 0x30a   : > { %2677 = vmatmul.mubr.msk.f32.vlgmr.msra.gmra.mrb[8].mxu0 %vm877_vm10, %v980_v19  ;;  %v2335_v19 = vld [vmem:[%s3417_s13 + $0x58] sm:$0xff] }
 0x30b   : > { %2680 = vmatpush3.msra.mxu0 %v889_v21  ;;  %2681 = vmatprep.mubr.msk.f32.mxu0 %vm2925_vm0, %v2926_v6  ;;  %v2847_v20 = vpack.c.bf16 %v2335_v19, %v2334_v18  ;;  %v2336_v21 = vld [vmem:[%s3417_s13 + $0x60] sm:$0xff] }
 0x30c   : > { %2689 = vmatprep.subr.mxu0 %v2926_v6  ;;  %v2899_v22 = vpop.eup %2898  ;;  %v1714_v31 = vpop.xlane.xlu1 %1713 }
 0x30d   : > { %v888_v23 = vmul.f32 %v2899_v22, %v2885_v52  ;;  %v2901_v27 = vpop.eup %2900  ;;  %2906 = vrcp.f32 %v1714_v31  ;;  %v2337_v22 = vld [vmem:[%s3417_s13 + $0x68] sm:$0xff] }
 0x30e   : > { %v1218_v26 = vmul.f32 %v2901_v27, %v3207_v49 }
 0x310   : > { %v2903_v34 = vpop.eup %2902  ;;  %v1880_v35 = vpop.xlane.xlu0 %1879 }
 0x311   : > { %v1384_v30 = vmul.f32 %v2903_v34, %v3212_v57  ;;  %2908 = vrcp.f32 %v1880_v35  ;;  %v2549_v34 = vld [vmem:[%s3414_s10] ss:$0 sm:$0xff] }
 0x312   : > { %2682 = vmatmul.mubr.msk.f32.vlgmr.msra.gmra.mrb[8].mxu0 %vm877_vm10, %v888_v23  ;;  %v2850_v23 = vpack.c.bf16 %v2337_v22, %v2336_v21 }
 0x313   : > { %2690 = vmatpush3.msra.mxu0 %v1219_v25  ;;  %2691 = vmatprep.mubr.msk.f32.mxu0 %vm2925_vm0, %v2926_v6  ;;  %v2905_v37 = vpop.eup %2904 }
 0x314   : > { %2699 = vmatprep.subr.mxu0 %v2926_v6  ;;  %v1550_v33 = vmul.f32 %v2905_v37, %v3216_v62  ;;  %v2046_v40 = vpop.xlane.xlu1 %2045  ;;  %v2242_v62 = vld [vmem:[%s3415_s11 + $0x18] sm:$0xff] }
 0x315   : > { %2910 = vrcp.f32 %v2046_v40  ;;  %v2552_v40 = vld [vmem:[%s3418_s14] ss:$0 sm:$0xff] }
 0x317   : > { %v2907_v39 = vpop.eup %2906 }
 0x318   : > { %v1716_v38 = vmul.f32 %v2907_v39, %v3220_v1  ;;  %v2325_v1 = vld [vmem:[%s3417_s13 + $0x8] sm:$0xff] }
 0x31a   : > { %2692 = vmatmul.mubr.msk.f32.vlgmr.msra.gmra.mrb[8].mxu0 %vm877_vm10, %v1218_v26 }
 0x31b   : > { %2700 = vmatpush3.msra.mxu0 %v1385_v29  ;;  %2701 = vmatprep.mubr.msk.f32.mxu0 %vm2925_vm0, %v2926_v6  ;;  %v2909_v41 = vpop.eup %2908 }
 0x31c   : > { %2709 = vmatprep.subr.mxu0 %v2926_v6  ;;  %v1882_v44 = vmul.f32 %v2909_v41, %v3224_v4  ;;  %v2832_v4 = vpack.c.bf16 %v2325_v1, %v2324_v0 }
 0x31f   : > { %v2911_v43 = vpop.eup %2910 }
 0x320   : > { %v2048_v47 = vmul.f32 %v2911_v43, %v3228_v7  ;;  %v2835_v7 = vpack.c.bf16 %v2327_v5, %v2326_v2 }
 0x322   : > { %2702 = vmatmul.mubr.msk.f32.vlgmr.msra.gmra.mrb[8].mxu0 %vm877_vm10, %v1384_v30 }
 0x323   : > { %2710 = vmatpush3.msra.mxu0 %v1551_v32  ;;  %2711 = vmatprep.mubr.msk.f32.mxu0 %vm2925_vm0, %v2926_v6  ;;  %v2339_v32 = vld [vmem:[%s3417_s13 + $0x78] sm:$0xff] }
 0x324   : > { %2719 = vmatprep.subr.mxu0 %v2926_v6 }
 0x32a   : > { %2712 = vmatmul.mubr.msk.f32.vlgmr.msra.gmra.mrb[8].mxu0 %vm877_vm10, %v1550_v33  ;;  %v2550_v33 = vld [vmem:[%s3416_s12] ss:$0 sm:$0xff] }
 0x32b   : > { %2720 = vmatpush3.msra.mxu0 %v1717_v36  ;;  %2721 = vmatprep.mubr.msk.f32.mxu0 %vm2925_vm0, %v2926_v6 }
 0x32c   : > { %2729 = vmatprep.subr.mxu0 %v2926_v6 }
 0x332   : > { %2722 = vmatmul.mubr.msk.f32.vlgmr.msra.gmra.mrb[8].mxu0 %vm877_vm10, %v1716_v38 }
 0x333   : > { %2730 = vmatpush3.msra.mxu0 %v1883_v42  ;;  %2731 = vmatprep.mubr.msk.f32.mxu0 %vm2925_vm0, %v2926_v6 }
 0x334   : > { %2739 = vmatprep.subr.mxu0 %v2926_v6 }
 0x33a   : > { %2732 = vmatmul.mubr.msk.f32.vlgmr.msra.gmra.mrb[8].mxu0 %vm877_vm10, %v1882_v44 }
 0x33b   : > { %2740 = vmatpush3.msra.mxu0 %v2049_v46  ;;  %2741 = vmatprep.mubr.msk.f32.mxu0 %vm2925_vm0, %v2926_v6 }
 0x33c   : > { %2825 = vmatprep.subr.bf16.mxu0 %v2924_v3 }
 0x342   : > { %2742 = vmatmul.mubr.msk.f32.vlgmr.msra.gmra.mrb[8].mxu0 %vm877_vm10, %v2048_v47 }
 0x343   : > { %2763 = vmatprep.mubr.msk.f32.mxu0 %vm2925_vm0, %v2926_v6 }
 0x415   : > { %v2119_v48 = vpop.f32.mrb[8].mxu0 }
 0x416   : > { %v2743_v49 = vpop.f32.mrb[9].mxu0  ;;  %2753 = vmatmul.mubr.msk.f32.vlgmr.msra.gmra.mrb[14].mxu1 %vm556_vm1, %v2119_v48 }
 0x417   : > { %2798 = vmatprep.mubr.msk.f32.mxu1 %vm2925_vm0, %v2926_v6  ;;  %v2239_v6 = vld [vmem:[%s3415_s11] sm:$0xff]  ;;  %2833 = vmatpush3.bf16.msra.mxu1 %v2832_v4 }
 0x418   : > { %v2826_v61 = vpack.c.bf16 %v2240_v60, %v2239_v6  ;;  %2834 = vmatprep.subr.bf16.mxu1 %v2924_v3 }
 0x41a   : > { %2827 = vmatpush3.bf16.msra.mxu0 %v2826_v61 }
 0x41b   : > { %2828 = vmatprep.subr.bf16.mxu0 %v2924_v3  ;;  %2836 = vmatpush3.bf16.msra.mxu1 %v2835_v7 }
 0x41c   : > { %2837 = vmatprep.subr.bf16.mxu1 %v2924_v3 }
 0x41f   : > { %2839 = vmatpush3.bf16.msra.mxu1 %v2838_v11 }
 0x420   : > { %2840 = vmatprep.subr.bf16.mxu1 %v2924_v3 }
 0x423   : > { %2842 = vmatpush3.bf16.msra.mxu1 %v2841_v14 }
 0x424   : > { %2843 = vmatprep.subr.bf16.mxu1 %v2924_v3 }
 0x427   : > { %2845 = vmatpush3.bf16.msra.mxu1 %v2844_v17 }
 0x428   : > { %2846 = vmatprep.subr.bf16.mxu1 %v2924_v3 }
 0x42b   : > { %2848 = vmatpush3.bf16.msra.mxu1 %v2847_v20 }
 0x42c   : > { %2849 = vmatprep.subr.bf16.mxu1 %v2924_v3 }
 0x42f   : > { %2851 = vmatpush3.bf16.msra.mxu1 %v2850_v23 }
 0x430   : > { %2852 = vmatprep.subr.bf16.mxu1 %v2924_v3  ;;  %v2338_v3 = vld [vmem:[%s3417_s13 + $0x70] sm:$0xff] }
 0x431   : > { %v2853_v37 = vpack.c.bf16 %v2339_v32, %v2338_v3 }
 0x433   : > { %2854 = vmatpush3.bf16.msra.mxu1 %v2853_v37 }
 0x4e9   : > { %v2204_v50 = vpop.f32.mrb[14].mxu1 }
 0x4ea   : > { %v2205_v51 = vadd.f32 %v2546_v45, %v2204_v50  ;;  %v2754_v52 = vpop.f32.mrb[15].mxu1 }
 0x4ec   : > { %v2208_v53 = vadd.f32 %v2205_v51, %v3058_v10  ;;  %v2241_v10 = vld [vmem:[%s3415_s11 + $0x10] sm:$0xff] }
 0x4ed   : > { %v2829_v63 = vpack.c.bf16 %v2242_v62, %v2241_v10 }
 0x4ee   : > { %v2209_v54 = vsel %vm556_vm1, %v2208_v53, 0.0 }
 0x4ef   : > { %2210 = vadd.xlane.f32.xlu0 %v2209_v54  ;;  %2830 = vmatpush3.bf16.msra.mxu0 %v2829_v63 }
 0x57c   : > { %v2211_v55 = vpop.xlane.xlu0 %2210 }
 0x57d   : > { %v2213_v56 = vmul.f32 0.03125, %v2211_v55  ;;  %v2553_v55 = vld [vmem:[%s3419_s15] ss:$0 sm:$0xff] }
 0x57f   : > { %v2214_v57 = vsub.f32 %v2208_v53, %v2213_v56 }
 0x581   : > { %v2215_v58 = vmul.f32 %v2214_v57, %v2214_v57 }
 0x583   : > { %v2216_v59 = vsel %vm556_vm1, %v2215_v58, 0.0 }
 0x584   : > { %2217 = vadd.xlane.f32.xlu1 %v2216_v59 }
 0x611   : > { %v2218_v24 = vpop.xlane.xlu1 %2217 }
 0x612   : > { %v2219_v25 = vmul.f32 0.03125, %v2218_v24 }
 0x614   : > { %v2220_v27 = vadd.f32 1e-05, %v2219_v25 }
 0x616   : > { %2912 = vrsqrt.f32 %v2220_v27 }
 0x620   : > { %v2913_v26 = vpop.eup %2912 }
 0x621   : > { %v2222_v29 = vmul.f32 %v2913_v26, %v2214_v57  ;;  %v2554_v57 = vld [vmem:[%s3420_s16] ss:$0 sm:$0xff] }
 0x623   : > { %v2230_v30 = vmul.f32 %v2548_v28, %v2222_v29 }
 0x625   : > { %v2238_v31 = vadd.f32 %v2549_v34, %v2230_v30 }
 0x627   : > { %2764 = vmatmul.mubr.msk.f32.vlgmr.msra.gmra.mrb[10].mxu0 %vm556_vm1, %v2238_v31 }
 0x6fa   : > { %v2319_v35 = vpop.f32.mrb[10].mxu0 }
 0x6fb   : > { %v2320_v36 = vadd.f32 %v2550_v33, %v2319_v35  ;;  %v2765_v39 = vpop.f32.mrb[11].mxu0 }
 0x6fd   : > { %v2323_v38 = vmax.f32 %v2320_v36, 0.0 }
 0x6ff   : > { %2799 = vmatmul.mubr.f32.vlgmr.msra.gmra.mrb[16].mxu1 %v2323_v38 }
 0x7d2   : > { %v2413_v42 = vpop.f32.mrb[16].mxu1 }
 0x7d3   : > { %v2414_v41 = vadd.f32 %v2552_v40, %v2413_v42  ;;  %v2800_v44 = vpop.f32.mrb[17].mxu1 }
 0x7d5   : > { %v2417_v46 = vadd.f32 %v2414_v41, %v2238_v31 }
 0x7d7   : > { %v2418_v43 = vsel %vm556_vm1, %v2417_v46, 0.0 }
 0x7d8   : > { %2419 = vadd.xlane.f32.xlu0 %v2418_v43 }
 0x865   : > { %v2420_v47 = vpop.xlane.xlu0 %2419 }
 0x866   : > { %v2421_v48 = vmul.f32 0.03125, %v2420_v47 }
 0x868   : > { %v2422_v49 = vsub.f32 %v2417_v46, %v2421_v48 }
 0x86a   : > { %v2423_v45 = vmul.f32 %v2422_v49, %v2422_v49 }
 0x86c   : > { %v2424_v50 = vsel %vm556_vm1, %v2423_v45, 0.0 }
 0x86d   : > { %2425 = vadd.xlane.f32.xlu1 %v2424_v50 }
 0x8fa   : > { %v2426_v51 = vpop.xlane.xlu1 %2425 }
 0x8fb   : > { %v2427_v52 = vmul.f32 0.03125, %v2426_v51 }
 0x8fd   : > { %v2428_v53 = vadd.f32 1e-05, %v2427_v52 }
 0x8ff   : > { %2914 = vrsqrt.f32 %v2428_v53 }
 0x909   : > { %v2915_v54 = vpop.eup %2914 }
 0x90a   : > { %v2430_v56 = vmul.f32 %v2915_v54, %v2422_v49 }
 0x90c   : > { %v2438_v58 = vmul.f32 %v2553_v55, %v2430_v56 }
 0x90e   : > { %v2446_v59 = vadd.f32 %v2554_v57, %v2438_v58 }
 0x910   : > { %2447 = vst.msk [vmem:[%s543_s22] sm:$0xff] %vm556_vm1, %v2446_v59 }
 0x911 PF: > { %s27_s24 = sadd.s32 1, %s2922_s24  }
 0x912   : > { %p24_p4 = scmp.ge.s32.totalorder %s27_s24, 4  }
 0x914   :  { %26 = sbr.rel (!%p24_p4) target bundleno = 3 (0x3), region = 118 }

</bundles_post_ra>
